<compile_context>
chip_gen: v6e
topology: v6e:2x2x1
jax: 0.10.0
libtpu: 0.0.40
codegen_flags: <defaults>
</compile_context>

<pallas_src>
import functools
import math

import jax
import jax.numpy as jnp
from jax.experimental import pallas as pl
from jax.experimental.pallas import tpu as pltpu

# ----------------------------- tiny BERT config ------------------------------
VOCAB = 100
MAX_POS = 16
B = 2            # batch
S = 8            # sequence length
H = 32           # hidden size
NH = 4           # attention heads
HD = H // NH     # head dim
FF = 64          # FFN intermediate size
NLAYERS = 2
PAD_ID = 0
LN_EPS = 1e-12   # BERT default layer-norm eps
DROPOUT_P = 0.0  # nn.Dropout(0.0) -> identity (module default)
NEG_INF = -1e9

# packed-vector slab layout: (2 + 8*L, 128) f32
ROW_EMB_G = 0
ROW_EMB_B = 1
ROWS_PER_LAYER = 8   # [b_qkv(3H), bo(H), ln1_g, ln1_b, b1(FF), b2(H), ln2_g, ln2_b]
VEC_ROWS = 2 + ROWS_PER_LAYER * NLAYERS


# ------------------------------ in-kernel math --------------------------------
def _layernorm(x, g, b):
    mu = jnp.mean(x, axis=-1, keepdims=True)
    var = jnp.mean((x - mu) ** 2, axis=-1, keepdims=True)
    return (x - mu) * jax.lax.rsqrt(var + LN_EPS) * g + b


def _gelu(x):
    # tanh-approximate GELU
    # TODO(synk): exact erf GELU if bit-exact parity with HF BERT is required.
    c = math.sqrt(2.0 / math.pi)
    return 0.5 * x * (1.0 + jnp.tanh(c * (x + 0.044715 * x * x * x)))


def _encoder_body(x_emb, mask_row, wqkv_ref, wo_ref, w1_ref, w2_ref, vecs):
    """BERT encoder for ONE sequence; everything stays in VMEM.

    x_emb:    (S, H) f32   summed word+pos+type embeddings
    mask_row: (1, S) f32   1 = real token, 0 = padding
    wqkv_ref: (L, H, 3H) bf16   fused Q|K|V projection (scale folded into Wq)
    wo_ref:   (L, H, H)  bf16
    w1_ref:   (L, H, FF) bf16
    w2_ref:   (L, FF, H) bf16
    vecs:     (2+8L, 128) f32   packed LN params + biases
    """
    # additive key-padding bias, built in-kernel from the float mask.
    key_bias = jnp.where(mask_row > 0.5, 0.0, NEG_INF)                 # (1, S)

    x = _layernorm(x_emb, vecs[ROW_EMB_G:ROW_EMB_G + 1, :H],
                   vecs[ROW_EMB_B:ROW_EMB_B + 1, :H])                  # (S, H)

    for l in range(NLAYERS):                                           # static unroll
        r = 2 + ROWS_PER_LAYER * l
        bqkv = vecs[r + 0:r + 1, :3 * H]                               # (1, 3H)
        bo = vecs[r + 1:r + 2, :H]
        ln1g, ln1b = vecs[r + 2:r + 3, :H], vecs[r + 3:r + 4, :H]
        b1 = vecs[r + 4:r + 5, :FF]
        b2 = vecs[r + 5:r + 6, :H]
        ln2g, ln2b = vecs[r + 6:r + 7, :H], vecs[r + 7:r + 8, :H]

        # ---- self-attention ----
        # fused QKV: one lane-dense (S,H)@(H,3H) bf16 MXU matmul, f32 accumulate.
        qkv = jnp.dot(x.astype(jnp.bfloat16), wqkv_ref[l],
                      preferred_element_type=jnp.float32) + bqkv       # (S, 3H) f32

        ctx_heads = []
        for h in range(NH):                                            # static, NH=4
            qh = qkv[:, h * HD:(h + 1) * HD].astype(jnp.bfloat16)          # (S, HD)
            kh = qkv[:, H + h * HD:H + (h + 1) * HD].astype(jnp.bfloat16)
            vh = qkv[:, 2 * H + h * HD:2 * H + (h + 1) * HD].astype(jnp.bfloat16)
            # scores (scale already folded into Wq/bq)
            s = jax.lax.dot_general(qh, kh, (((1,), (1,)), ((), ())),
                                    preferred_element_type=jnp.float32)    # (S, S)
            s = s + key_bias
            s = s - jnp.max(s, axis=-1, keepdims=True)
            p = jnp.exp(s)
            p = p * pl.reciprocal(jnp.sum(p, axis=-1, keepdims=True), approx=True)
            ctx_heads.append(jnp.dot(p.astype(jnp.bfloat16), vh,
                                     preferred_element_type=jnp.float32))  # (S, HD)

        ctx = jnp.concatenate(ctx_heads, axis=-1)                      # (S, H) lane-dense
        attn = jnp.dot(ctx.astype(jnp.bfloat16), wo_ref[l],
                       preferred_element_type=jnp.float32) + bo        # one K=32 matmul
        x = _layernorm(x + attn, ln1g, ln1b)                           # post-LN (BERT)

        # ---- FFN ----
        hid = _gelu(jnp.dot(x.astype(jnp.bfloat16), w1_ref[l],
                            preferred_element_type=jnp.float32) + b1)  # (S, FF)
        ffn = jnp.dot(hid.astype(jnp.bfloat16), w2_ref[l],
                      preferred_element_type=jnp.float32) + b2         # (S, H)
        x = _layernorm(x + ffn, ln2g, ln2b)
    return x                                                           # (S, H) f32


# --------------------------------- kernels ------------------------------------
def _bert_seq_kernel(x_ref, mask_ref, wqkv_ref, wo_ref, w1_ref, w2_ref, vec_ref,
                     out_ref):
    x = _encoder_body(x_ref[0], mask_ref[0], wqkv_ref, wo_ref, w1_ref, w2_ref,
                      vec_ref[...])
    out_ref[0] = x.astype(out_ref.dtype)                               # (S, H)


def _bert_pool_kernel(x_ref, mask_ref, wqkv_ref, wo_ref, w1_ref, w2_ref, vec_ref,
                      out_ref):
    mrow = mask_ref[0]                                                 # (1, S)
    x = _encoder_body(x_ref[0], mrow, wqkv_ref, wo_ref, w1_ref, w2_ref,
                      vec_ref[...])
    cnt = jnp.maximum(jnp.sum(mrow, axis=-1, keepdims=True), 1.0)      # guard all-pad
    pooled = jnp.dot(mrow, x, preferred_element_type=jnp.float32) / cnt  # (1, H)
    # write a full 8-sublane block (row 0 is the result; wrapper slices it out)
    out_ref[0] = jnp.broadcast_to(pooled, (8, H)).astype(out_ref.dtype)


# ------------------------------ parameter init ---------------------------------
def init_params(key):
    def nrm(k, shape):
        return 0.02 * jax.random.normal(k, shape, jnp.float32)

    def pad128(v):
        return jnp.pad(v, (0, 128 - v.shape[0]))

    scale = 1.0 / math.sqrt(HD)
    keys = jax.random.split(key, 3 + NLAYERS)
    zeros_h = jnp.zeros((H,), jnp.float32)
    ones_h = jnp.ones((H,), jnp.float32)

    wqkv_l, wo_l, w1_l, w2_l = [], [], [], []
    vec_rows = [pad128(ones_h), pad128(zeros_h)]                       # emb LN gamma/beta

    for l in range(NLAYERS):
        ks = jax.random.split(keys[3 + l], 6)
        wq, wk, wv = nrm(ks[0], (H, H)), nrm(ks[1], (H, H)), nrm(ks[2], (H, H))
        wo, w1, w2 = nrm(ks[3], (H, H)), nrm(ks[4], (H, FF)), nrm(ks[5], (FF, H))
        bq = bk = bv = jnp.zeros((H,), jnp.float32)
        # fold 1/sqrt(HD) into the Q projection at pack time
        wqkv_l.append(jnp.concatenate([wq * scale, wk, wv], axis=1))   # (H, 3H)
        wo_l.append(wo)
        w1_l.append(w1)
        w2_l.append(w2)
        vec_rows.extend([
            pad128(jnp.concatenate([bq * scale, bk, bv], axis=0)),     # b_qkv
            pad128(zeros_h),                                           # bo
            pad128(ones_h), pad128(zeros_h),                           # ln1 gamma/beta
            pad128(jnp.zeros((FF,), jnp.float32)),                     # b1
            pad128(zeros_h),                                           # b2
            pad128(ones_h), pad128(zeros_h),                           # ln2 gamma/beta
        ])

    return {
        "word_emb": nrm(keys[0], (VOCAB, H)),
        "pos_emb": nrm(keys[1], (MAX_POS, H)),
        "type_emb": nrm(keys[2], (2, H)),
        "w_qkv": jnp.stack(wqkv_l).astype(jnp.bfloat16),               # (L, H, 3H)
        "w_o": jnp.stack(wo_l).astype(jnp.bfloat16),                   # (L, H, H)
        "w1": jnp.stack(w1_l).astype(jnp.bfloat16),                    # (L, H, FF)
        "w2": jnp.stack(w2_l).astype(jnp.bfloat16),                    # (L, FF, H)
        "vecs": jnp.stack(vec_rows),                                   # (2+8L, 128) f32
    }


# ------------------------------ forward (module) -------------------------------
@functools.partial(jax.jit, static_argnames=("pooling",))
def bert_encoder_forward(params, inputs, masks=None, pooling=False, **kwargs):
    """Mirrors BERTEncoder.forward: returns {**kwargs, 'outputs', 'masks'}."""
    if masks is None:
        masks = inputs != PAD_ID                                       # (B, S) bool
    Bx, Sx = inputs.shape

    # --- BERT embeddings (gather is glue; LN runs inside the fused kernel) ---
    x = (params["word_emb"][inputs]
         + params["pos_emb"][None, :Sx, :]
         + params["type_emb"][0][None, None, :]).astype(jnp.float32)   # (B, S, H)
    mask_f = masks.astype(jnp.float32).reshape(Bx, 1, Sx)              # (B, 1, S)

    in_specs = [
        pl.BlockSpec((1, Sx, H), lambda b: (b, 0, 0)),                 # x (per sequence)
        pl.BlockSpec((1, 1, Sx), lambda b: (b, 0, 0)),                 # mask row
        pl.BlockSpec((NLAYERS, H, 3 * H), lambda b: (0, 0, 0)),        # w_qkv (resident)
        pl.BlockSpec((NLAYERS, H, H), lambda b: (0, 0, 0)),            # w_o
        pl.BlockSpec((NLAYERS, H, FF), lambda b: (0, 0, 0)),           # w1
        pl.BlockSpec((NLAYERS, FF, H), lambda b: (0, 0, 0)),           # w2
        pl.BlockSpec((VEC_ROWS, 128), lambda b: (0, 0)),               # packed vectors
    ]
    args = (x, mask_f, params["w_qkv"], params["w_o"], params["w1"],
            params["w2"], params["vecs"])
    cparams = pltpu.CompilerParams(dimension_semantics=("parallel",))

    if pooling:
        pooled8 = pl.pallas_call(
            _bert_pool_kernel,
            grid=(Bx,),
            in_specs=in_specs,
            out_specs=pl.BlockSpec((1, 8, H), lambda b: (b, 0, 0)),
            out_shape=jax.ShapeDtypeStruct((Bx, 8, H), jnp.float32),
            compiler_params=cparams,
        )(*args)
        bert_out = pooled8[:, 0, :]                                    # (B, H)
    else:
        bert_out = pl.pallas_call(
            _bert_seq_kernel,
            grid=(Bx,),
            in_specs=in_specs,
            out_specs=pl.BlockSpec((1, Sx, H), lambda b: (b, 0, 0)),
            out_shape=jax.ShapeDtypeStruct((Bx, Sx, H), jnp.float32),
            compiler_params=cparams,
        )(*args)                                                       # (B, S, H)

    # nn.Dropout(p=0.0) is the identity.
    return {**kwargs, "outputs": bert_out, "masks": masks}


# ----------------------------------- main ---------------------------------------
if __name__ == "__main__":
    key = jax.random.PRNGKey(0)
    pkey, tkey = jax.random.split(key)
    params = init_params(pkey)

    # deterministic small token batch; pad the tail of sequence 1 so masks vary
    inputs = jax.random.randint(tkey, (B, S), 1, VOCAB, dtype=jnp.int32)
    inputs = inputs.at[1, -3:].set(PAD_ID)

    out_seq = bert_encoder_forward(params, inputs, pooling=False)
    out_pool = bert_encoder_forward(params, inputs, pooling=True)

    jax.block_until_ready(out_seq["outputs"])
    jax.block_until_ready(out_pool["outputs"])

    assert out_seq["outputs"].shape == (B, S, H)
    assert out_pool["outputs"].shape == (B, H)
    assert out_seq["masks"].shape == (B, S)

    # consistency check: pooled kernel output == masked mean of sequence output
    m = out_seq["masks"].astype(jnp.float32)
    ref_pool = ((out_seq["outputs"] * m[..., None]).sum(axis=-2)
                / jnp.maximum(m.sum(axis=-1, keepdims=True), 1.0))
    assert jnp.allclose(ref_pool, out_pool["outputs"], atol=1e-3)

    print("KERNEL_OK")
</pallas_src>

<mosaic_0001>
module attributes {stable_mosaic.version = 11 : i64} {
  func.func @_bert_seq_kernel(%arg0: i32, %arg1: memref<1x8x32xf32, #tpu.memory_space<vmem>>, %arg2: memref<1x1x8xf32, #tpu.memory_space<vmem>>, %arg3: memref<2x32x96xbf16, #tpu.memory_space<vmem>>, %arg4: memref<2x32x32xbf16, #tpu.memory_space<vmem>>, %arg5: memref<2x32x64xbf16, #tpu.memory_space<vmem>>, %arg6: memref<2x64x32xbf16, #tpu.memory_space<vmem>>, %arg7: memref<18x128xf32, #tpu.memory_space<vmem>>, %arg8: memref<1x8x32xf32, #tpu.memory_space<vmem>>) attributes {dimension_semantics = [#tpu.dimension_semantics<parallel>], iteration_bounds = array<i64: 2>, scalar_prefetch = 0 : i64, scratch_operands = 0 : i64, tpu.core_type = #tpu.core_type<tc>, window_params = [{transform_indices = @transform_0, window_bounds = array<i64: 1, 8, 32>}, {transform_indices = @transform_1, window_bounds = array<i64: 1, 1, 8>}, {pipeline_mode = #tpu.pipeline_mode<synchronous>, transform_indices = @transform_2, window_bounds = array<i64: 2, 32, 96>}, {pipeline_mode = #tpu.pipeline_mode<synchronous>, transform_indices = @transform_3, window_bounds = array<i64: 2, 32, 32>}, {pipeline_mode = #tpu.pipeline_mode<synchronous>, transform_indices = @transform_4, window_bounds = array<i64: 2, 32, 64>}, {pipeline_mode = #tpu.pipeline_mode<synchronous>, transform_indices = @transform_5, window_bounds = array<i64: 2, 64, 32>}, {pipeline_mode = #tpu.pipeline_mode<synchronous>, transform_indices = @transform_6, window_bounds = array<i64: 18, 128>}, {transform_indices = @transform_7, window_bounds = array<i64: 1, 8, 32>}]} {
    %c0 = arith.constant 0 : index
    %c0_0 = arith.constant 0 : index
    %c0_1 = arith.constant 0 : index
    %0 = vector.load %arg1[%c0, %c0_0, %c0_1] : memref<1x8x32xf32, #tpu.memory_space<vmem>>, vector<1x8x32xf32>
    %1 = vector.shape_cast %0 : vector<1x8x32xf32> to vector<8x32xf32>
    %c0_2 = arith.constant 0 : index
    %c0_3 = arith.constant 0 : index
    %c0_4 = arith.constant 0 : index
    %2 = vector.load %arg2[%c0_2, %c0_3, %c0_4] : memref<1x1x8xf32, #tpu.memory_space<vmem>>, vector<1x1x8xf32>
    %3 = vector.shape_cast %2 : vector<1x1x8xf32> to vector<1x8xf32>
    %c0_5 = arith.constant 0 : index
    %c0_6 = arith.constant 0 : index
    %4 = vector.load %arg7[%c0_5, %c0_6] : memref<18x128xf32, #tpu.memory_space<vmem>>, vector<18x128xf32>
    %cst = arith.constant 5.000000e-01 : f32
    %5 = vector.broadcast %cst : f32 to vector<1x8xf32>
    %6 = arith.cmpf ogt, %3, %5 : vector<1x8xf32>
    %cst_7 = arith.constant 0.000000e+00 : f32
    %cst_8 = arith.constant -1.000000e+09 : f32
    %7 = vector.broadcast %cst_7 : f32 to vector<1x8xf32>
    %8 = vector.broadcast %cst_8 : f32 to vector<1x8xf32>
    %9 = arith.select %6, %7, %8 : vector<1x8xi1>, vector<1x8xf32>
    %10 = vector.extract_strided_slice %4 {offsets = [0, 0], sizes = [1, 32], strides = [1, 1]} : vector<18x128xf32> to vector<1x32xf32>
    %11 = vector.extract_strided_slice %4 {offsets = [1, 0], sizes = [1, 32], strides = [1, 1]} : vector<18x128xf32> to vector<1x32xf32>
    %cst_9 = arith.constant dense<0.000000e+00> : vector<8xf32>
    %12 = vector.multi_reduction <add>, %1, %cst_9 [1] : vector<8x32xf32> to vector<8xf32>
    %13 = vector.shape_cast %12 : vector<8xf32> to vector<8x1xf32>
    %cst_10 = arith.constant 3.200000e+01 : f32
    %14 = vector.broadcast %cst_10 : f32 to vector<8x1xf32>
    %15 = arith.divf %13, %14 : vector<8x1xf32>
    %16 = vector.broadcast %15 : vector<8x1xf32> to vector<8x32xf32>
    %17 = arith.subf %1, %16 : vector<8x32xf32>
    %18 = arith.mulf %17, %17 : vector<8x32xf32>
    %cst_11 = arith.constant dense<0.000000e+00> : vector<8xf32>
    %19 = vector.multi_reduction <add>, %18, %cst_11 [1] : vector<8x32xf32> to vector<8xf32>
    %20 = vector.shape_cast %19 : vector<8xf32> to vector<8x1xf32>
    %cst_12 = arith.constant 3.200000e+01 : f32
    %21 = vector.broadcast %cst_12 : f32 to vector<8x1xf32>
    %22 = arith.divf %20, %21 : vector<8x1xf32>
    %23 = vector.broadcast %15 : vector<8x1xf32> to vector<8x32xf32>
    %24 = arith.subf %1, %23 : vector<8x32xf32>
    %cst_13 = arith.constant 9.99999996E-13 : f32
    %25 = vector.broadcast %cst_13 : f32 to vector<8x1xf32>
    %26 = arith.addf %22, %25 : vector<8x1xf32>
    %27 = math.rsqrt %26 : vector<8x1xf32>
    %28 = vector.broadcast %27 : vector<8x1xf32> to vector<8x32xf32>
    %29 = arith.mulf %24, %28 : vector<8x32xf32>
    %30 = vector.broadcast %10 : vector<1x32xf32> to vector<8x32xf32>
    %31 = arith.mulf %29, %30 : vector<8x32xf32>
    %32 = vector.broadcast %11 : vector<1x32xf32> to vector<8x32xf32>
    %33 = arith.addf %31, %32 : vector<8x32xf32>
    %34 = vector.extract_strided_slice %4 {offsets = [2, 0], sizes = [1, 96], strides = [1, 1]} : vector<18x128xf32> to vector<1x96xf32>
    %35 = vector.extract_strided_slice %4 {offsets = [3, 0], sizes = [1, 32], strides = [1, 1]} : vector<18x128xf32> to vector<1x32xf32>
    %36 = vector.extract_strided_slice %4 {offsets = [4, 0], sizes = [1, 32], strides = [1, 1]} : vector<18x128xf32> to vector<1x32xf32>
    %37 = vector.extract_strided_slice %4 {offsets = [5, 0], sizes = [1, 32], strides = [1, 1]} : vector<18x128xf32> to vector<1x32xf32>
    %38 = vector.extract_strided_slice %4 {offsets = [6, 0], sizes = [1, 64], strides = [1, 1]} : vector<18x128xf32> to vector<1x64xf32>
    %39 = vector.extract_strided_slice %4 {offsets = [7, 0], sizes = [1, 32], strides = [1, 1]} : vector<18x128xf32> to vector<1x32xf32>
    %40 = vector.extract_strided_slice %4 {offsets = [8, 0], sizes = [1, 32], strides = [1, 1]} : vector<18x128xf32> to vector<1x32xf32>
    %41 = vector.extract_strided_slice %4 {offsets = [9, 0], sizes = [1, 32], strides = [1, 1]} : vector<18x128xf32> to vector<1x32xf32>
    %42 = arith.truncf %33 : vector<8x32xf32> to vector<8x32xbf16>
    %c0_14 = arith.constant 0 : index
    %c0_15 = arith.constant 0 : index
    %c0_16 = arith.constant 0 : index
    %43 = vector.load %arg3[%c0_14, %c0_15, %c0_16] : memref<2x32x96xbf16, #tpu.memory_space<vmem>>, vector<1x32x96xbf16>
    %44 = vector.shape_cast %43 : vector<1x32x96xbf16> to vector<32x96xbf16>
    %cst_17 = arith.constant dense<0.000000e+00> : vector<8x96xf32>
    %45 = tpu.matmul %42, %44, %cst_17 {dimension_numbers = #tpu.dot_dimension_numbers<[1], [0], [0], [1], [0, 0, 1, 1], [], []>} : vector<8x32xbf16>, vector<32x96xbf16>, vector<8x96xf32> -> vector<8x96xf32>
    %46 = vector.broadcast %34 : vector<1x96xf32> to vector<8x96xf32>
    %47 = arith.addf %45, %46 : vector<8x96xf32>
    %48 = vector.extract_strided_slice %47 {offsets = [0, 0], sizes = [8, 8], strides = [1, 1]} : vector<8x96xf32> to vector<8x8xf32>
    %49 = arith.truncf %48 : vector<8x8xf32> to vector<8x8xbf16>
    %50 = vector.extract_strided_slice %47 {offsets = [0, 32], sizes = [8, 8], strides = [1, 1]} : vector<8x96xf32> to vector<8x8xf32>
    %51 = arith.truncf %50 : vector<8x8xf32> to vector<8x8xbf16>
    %52 = vector.extract_strided_slice %47 {offsets = [0, 64], sizes = [8, 8], strides = [1, 1]} : vector<8x96xf32> to vector<8x8xf32>
    %53 = arith.truncf %52 : vector<8x8xf32> to vector<8x8xbf16>
    %cst_18 = arith.constant dense<0.000000e+00> : vector<8x8xf32>
    %54 = tpu.matmul %49, %51, %cst_18 {dimension_numbers = #tpu.dot_dimension_numbers<[1], [1], [0], [0], [0, 0, 1, 0], [], []>} : vector<8x8xbf16>, vector<8x8xbf16>, vector<8x8xf32> -> vector<8x8xf32>
    %55 = vector.broadcast %9 : vector<1x8xf32> to vector<8x8xf32>
    %56 = arith.addf %54, %55 : vector<8x8xf32>
    %cst_19 = arith.constant dense<0xFF800000> : vector<8xf32>
    %57 = vector.multi_reduction <maximumf>, %56, %cst_19 [1] : vector<8x8xf32> to vector<8xf32>
    %58 = vector.shape_cast %57 : vector<8xf32> to vector<8x1xf32>
    %59 = vector.broadcast %58 : vector<8x1xf32> to vector<8x8xf32>
    %60 = arith.subf %56, %59 : vector<8x8xf32>
    %61 = math.exp %60 : vector<8x8xf32>
    %cst_20 = arith.constant dense<0.000000e+00> : vector<8xf32>
    %62 = vector.multi_reduction <add>, %61, %cst_20 [1] : vector<8x8xf32> to vector<8xf32>
    %63 = vector.shape_cast %62 : vector<8xf32> to vector<8x1xf32>
    %64 = tpu.reciprocal %63 {approx = true} : vector<8x1xf32> -> vector<8x1xf32>
    %65 = vector.broadcast %64 : vector<8x1xf32> to vector<8x8xf32>
    %66 = arith.mulf %61, %65 : vector<8x8xf32>
    %67 = arith.truncf %66 : vector<8x8xf32> to vector<8x8xbf16>
    %cst_21 = arith.constant dense<0.000000e+00> : vector<8x8xf32>
    %68 = tpu.matmul %67, %53, %cst_21 {dimension_numbers = #tpu.dot_dimension_numbers<[1], [0], [0], [1], [0, 0, 1, 1], [], []>} : vector<8x8xbf16>, vector<8x8xbf16>, vector<8x8xf32> -> vector<8x8xf32>
    %69 = vector.extract_strided_slice %47 {offsets = [0, 8], sizes = [8, 8], strides = [1, 1]} : vector<8x96xf32> to vector<8x8xf32>
    %70 = arith.truncf %69 : vector<8x8xf32> to vector<8x8xbf16>
    %71 = vector.extract_strided_slice %47 {offsets = [0, 40], sizes = [8, 8], strides = [1, 1]} : vector<8x96xf32> to vector<8x8xf32>
    %72 = arith.truncf %71 : vector<8x8xf32> to vector<8x8xbf16>
    %73 = vector.extract_strided_slice %47 {offsets = [0, 72], sizes = [8, 8], strides = [1, 1]} : vector<8x96xf32> to vector<8x8xf32>
    %74 = arith.truncf %73 : vector<8x8xf32> to vector<8x8xbf16>
    %cst_22 = arith.constant dense<0.000000e+00> : vector<8x8xf32>
    %75 = tpu.matmul %70, %72, %cst_22 {dimension_numbers = #tpu.dot_dimension_numbers<[1], [1], [0], [0], [0, 0, 1, 0], [], []>} : vector<8x8xbf16>, vector<8x8xbf16>, vector<8x8xf32> -> vector<8x8xf32>
    %76 = vector.broadcast %9 : vector<1x8xf32> to vector<8x8xf32>
    %77 = arith.addf %75, %76 : vector<8x8xf32>
    %cst_23 = arith.constant dense<0xFF800000> : vector<8xf32>
    %78 = vector.multi_reduction <maximumf>, %77, %cst_23 [1] : vector<8x8xf32> to vector<8xf32>
    %79 = vector.shape_cast %78 : vector<8xf32> to vector<8x1xf32>
    %80 = vector.broadcast %79 : vector<8x1xf32> to vector<8x8xf32>
    %81 = arith.subf %77, %80 : vector<8x8xf32>
    %82 = math.exp %81 : vector<8x8xf32>
    %cst_24 = arith.constant dense<0.000000e+00> : vector<8xf32>
    %83 = vector.multi_reduction <add>, %82, %cst_24 [1] : vector<8x8xf32> to vector<8xf32>
    %84 = vector.shape_cast %83 : vector<8xf32> to vector<8x1xf32>
    %85 = tpu.reciprocal %84 {approx = true} : vector<8x1xf32> -> vector<8x1xf32>
    %86 = vector.broadcast %85 : vector<8x1xf32> to vector<8x8xf32>
    %87 = arith.mulf %82, %86 : vector<8x8xf32>
    %88 = arith.truncf %87 : vector<8x8xf32> to vector<8x8xbf16>
    %cst_25 = arith.constant dense<0.000000e+00> : vector<8x8xf32>
    %89 = tpu.matmul %88, %74, %cst_25 {dimension_numbers = #tpu.dot_dimension_numbers<[1], [0], [0], [1], [0, 0, 1, 1], [], []>} : vector<8x8xbf16>, vector<8x8xbf16>, vector<8x8xf32> -> vector<8x8xf32>
    %90 = vector.extract_strided_slice %47 {offsets = [0, 16], sizes = [8, 8], strides = [1, 1]} : vector<8x96xf32> to vector<8x8xf32>
    %91 = arith.truncf %90 : vector<8x8xf32> to vector<8x8xbf16>
    %92 = vector.extract_strided_slice %47 {offsets = [0, 48], sizes = [8, 8], strides = [1, 1]} : vector<8x96xf32> to vector<8x8xf32>
    %93 = arith.truncf %92 : vector<8x8xf32> to vector<8x8xbf16>
    %94 = vector.extract_strided_slice %47 {offsets = [0, 80], sizes = [8, 8], strides = [1, 1]} : vector<8x96xf32> to vector<8x8xf32>
    %95 = arith.truncf %94 : vector<8x8xf32> to vector<8x8xbf16>
    %cst_26 = arith.constant dense<0.000000e+00> : vector<8x8xf32>
    %96 = tpu.matmul %91, %93, %cst_26 {dimension_numbers = #tpu.dot_dimension_numbers<[1], [1], [0], [0], [0, 0, 1, 0], [], []>} : vector<8x8xbf16>, vector<8x8xbf16>, vector<8x8xf32> -> vector<8x8xf32>
    %97 = vector.broadcast %9 : vector<1x8xf32> to vector<8x8xf32>
    %98 = arith.addf %96, %97 : vector<8x8xf32>
    %cst_27 = arith.constant dense<0xFF800000> : vector<8xf32>
    %99 = vector.multi_reduction <maximumf>, %98, %cst_27 [1] : vector<8x8xf32> to vector<8xf32>
    %100 = vector.shape_cast %99 : vector<8xf32> to vector<8x1xf32>
    %101 = vector.broadcast %100 : vector<8x1xf32> to vector<8x8xf32>
    %102 = arith.subf %98, %101 : vector<8x8xf32>
    %103 = math.exp %102 : vector<8x8xf32>
    %cst_28 = arith.constant dense<0.000000e+00> : vector<8xf32>
    %104 = vector.multi_reduction <add>, %103, %cst_28 [1] : vector<8x8xf32> to vector<8xf32>
    %105 = vector.shape_cast %104 : vector<8xf32> to vector<8x1xf32>
    %106 = tpu.reciprocal %105 {approx = true} : vector<8x1xf32> -> vector<8x1xf32>
    %107 = vector.broadcast %106 : vector<8x1xf32> to vector<8x8xf32>
    %108 = arith.mulf %103, %107 : vector<8x8xf32>
    %109 = arith.truncf %108 : vector<8x8xf32> to vector<8x8xbf16>
    %cst_29 = arith.constant dense<0.000000e+00> : vector<8x8xf32>
    %110 = tpu.matmul %109, %95, %cst_29 {dimension_numbers = #tpu.dot_dimension_numbers<[1], [0], [0], [1], [0, 0, 1, 1], [], []>} : vector<8x8xbf16>, vector<8x8xbf16>, vector<8x8xf32> -> vector<8x8xf32>
    %111 = vector.extract_strided_slice %47 {offsets = [0, 24], sizes = [8, 8], strides = [1, 1]} : vector<8x96xf32> to vector<8x8xf32>
    %112 = arith.truncf %111 : vector<8x8xf32> to vector<8x8xbf16>
    %113 = vector.extract_strided_slice %47 {offsets = [0, 56], sizes = [8, 8], strides = [1, 1]} : vector<8x96xf32> to vector<8x8xf32>
    %114 = arith.truncf %113 : vector<8x8xf32> to vector<8x8xbf16>
    %115 = vector.extract_strided_slice %47 {offsets = [0, 88], sizes = [8, 8], strides = [1, 1]} : vector<8x96xf32> to vector<8x8xf32>
    %116 = arith.truncf %115 : vector<8x8xf32> to vector<8x8xbf16>
    %cst_30 = arith.constant dense<0.000000e+00> : vector<8x8xf32>
    %117 = tpu.matmul %112, %114, %cst_30 {dimension_numbers = #tpu.dot_dimension_numbers<[1], [1], [0], [0], [0, 0, 1, 0], [], []>} : vector<8x8xbf16>, vector<8x8xbf16>, vector<8x8xf32> -> vector<8x8xf32>
    %118 = vector.broadcast %9 : vector<1x8xf32> to vector<8x8xf32>
    %119 = arith.addf %117, %118 : vector<8x8xf32>
    %cst_31 = arith.constant dense<0xFF800000> : vector<8xf32>
    %120 = vector.multi_reduction <maximumf>, %119, %cst_31 [1] : vector<8x8xf32> to vector<8xf32>
    %121 = vector.shape_cast %120 : vector<8xf32> to vector<8x1xf32>
    %122 = vector.broadcast %121 : vector<8x1xf32> to vector<8x8xf32>
    %123 = arith.subf %119, %122 : vector<8x8xf32>
    %124 = math.exp %123 : vector<8x8xf32>
    %cst_32 = arith.constant dense<0.000000e+00> : vector<8xf32>
    %125 = vector.multi_reduction <add>, %124, %cst_32 [1] : vector<8x8xf32> to vector<8xf32>
    %126 = vector.shape_cast %125 : vector<8xf32> to vector<8x1xf32>
    %127 = tpu.reciprocal %126 {approx = true} : vector<8x1xf32> -> vector<8x1xf32>
    %128 = vector.broadcast %127 : vector<8x1xf32> to vector<8x8xf32>
    %129 = arith.mulf %124, %128 : vector<8x8xf32>
    %130 = arith.truncf %129 : vector<8x8xf32> to vector<8x8xbf16>
    %cst_33 = arith.constant dense<0.000000e+00> : vector<8x8xf32>
    %131 = tpu.matmul %130, %116, %cst_33 {dimension_numbers = #tpu.dot_dimension_numbers<[1], [0], [0], [1], [0, 0, 1, 1], [], []>} : vector<8x8xbf16>, vector<8x8xbf16>, vector<8x8xf32> -> vector<8x8xf32>
    %132 = tpu.concatenate %68, %89, %110, %131 in 1 : vector<8x8xf32>, vector<8x8xf32>, vector<8x8xf32>, vector<8x8xf32> -> vector<8x32xf32>
    %133 = arith.truncf %132 : vector<8x32xf32> to vector<8x32xbf16>
    %c0_34 = arith.constant 0 : index
    %c0_35 = arith.constant 0 : index
    %c0_36 = arith.constant 0 : index
    %134 = vector.load %arg4[%c0_34, %c0_35, %c0_36] : memref<2x32x32xbf16, #tpu.memory_space<vmem>>, vector<1x32x32xbf16>
    %135 = vector.shape_cast %134 : vector<1x32x32xbf16> to vector<32x32xbf16>
    %cst_37 = arith.constant dense<0.000000e+00> : vector<8x32xf32>
    %136 = tpu.matmul %133, %135, %cst_37 {dimension_numbers = #tpu.dot_dimension_numbers<[1], [0], [0], [1], [0, 0, 1, 1], [], []>} : vector<8x32xbf16>, vector<32x32xbf16>, vector<8x32xf32> -> vector<8x32xf32>
    %137 = vector.broadcast %35 : vector<1x32xf32> to vector<8x32xf32>
    %138 = arith.addf %136, %137 : vector<8x32xf32>
    %139 = arith.addf %33, %138 : vector<8x32xf32>
    %cst_38 = arith.constant dense<0.000000e+00> : vector<8xf32>
    %140 = vector.multi_reduction <add>, %139, %cst_38 [1] : vector<8x32xf32> to vector<8xf32>
    %141 = vector.shape_cast %140 : vector<8xf32> to vector<8x1xf32>
    %cst_39 = arith.constant 3.200000e+01 : f32
    %142 = vector.broadcast %cst_39 : f32 to vector<8x1xf32>
    %143 = arith.divf %141, %142 : vector<8x1xf32>
    %144 = vector.broadcast %143 : vector<8x1xf32> to vector<8x32xf32>
    %145 = arith.subf %139, %144 : vector<8x32xf32>
    %146 = arith.mulf %145, %145 : vector<8x32xf32>
    %cst_40 = arith.constant dense<0.000000e+00> : vector<8xf32>
    %147 = vector.multi_reduction <add>, %146, %cst_40 [1] : vector<8x32xf32> to vector<8xf32>
    %148 = vector.shape_cast %147 : vector<8xf32> to vector<8x1xf32>
    %cst_41 = arith.constant 3.200000e+01 : f32
    %149 = vector.broadcast %cst_41 : f32 to vector<8x1xf32>
    %150 = arith.divf %148, %149 : vector<8x1xf32>
    %151 = vector.broadcast %143 : vector<8x1xf32> to vector<8x32xf32>
    %152 = arith.subf %139, %151 : vector<8x32xf32>
    %cst_42 = arith.constant 9.99999996E-13 : f32
    %153 = vector.broadcast %cst_42 : f32 to vector<8x1xf32>
    %154 = arith.addf %150, %153 : vector<8x1xf32>
    %155 = math.rsqrt %154 : vector<8x1xf32>
    %156 = vector.broadcast %155 : vector<8x1xf32> to vector<8x32xf32>
    %157 = arith.mulf %152, %156 : vector<8x32xf32>
    %158 = vector.broadcast %36 : vector<1x32xf32> to vector<8x32xf32>
    %159 = arith.mulf %157, %158 : vector<8x32xf32>
    %160 = vector.broadcast %37 : vector<1x32xf32> to vector<8x32xf32>
    %161 = arith.addf %159, %160 : vector<8x32xf32>
    %162 = arith.truncf %161 : vector<8x32xf32> to vector<8x32xbf16>
    %c0_43 = arith.constant 0 : index
    %c0_44 = arith.constant 0 : index
    %c0_45 = arith.constant 0 : index
    %163 = vector.load %arg5[%c0_43, %c0_44, %c0_45] : memref<2x32x64xbf16, #tpu.memory_space<vmem>>, vector<1x32x64xbf16>
    %164 = vector.shape_cast %163 : vector<1x32x64xbf16> to vector<32x64xbf16>
    %cst_46 = arith.constant dense<0.000000e+00> : vector<8x64xf32>
    %165 = tpu.matmul %162, %164, %cst_46 {dimension_numbers = #tpu.dot_dimension_numbers<[1], [0], [0], [1], [0, 0, 1, 1], [], []>} : vector<8x32xbf16>, vector<32x64xbf16>, vector<8x64xf32> -> vector<8x64xf32>
    %166 = vector.broadcast %38 : vector<1x64xf32> to vector<8x64xf32>
    %167 = arith.addf %165, %166 : vector<8x64xf32>
    %cst_47 = arith.constant 5.000000e-01 : f32
    %168 = vector.broadcast %cst_47 : f32 to vector<8x64xf32>
    %169 = arith.mulf %168, %167 : vector<8x64xf32>
    %cst_48 = arith.constant 4.471500e-02 : f32
    %170 = vector.broadcast %cst_48 : f32 to vector<8x64xf32>
    %171 = arith.mulf %170, %167 : vector<8x64xf32>
    %172 = arith.mulf %171, %167 : vector<8x64xf32>
    %173 = arith.mulf %172, %167 : vector<8x64xf32>
    %174 = arith.addf %167, %173 : vector<8x64xf32>
    %cst_49 = arith.constant 0.797884583 : f32
    %175 = vector.broadcast %cst_49 : f32 to vector<8x64xf32>
    %176 = arith.mulf %175, %174 : vector<8x64xf32>
    %177 = math.tanh %176 : vector<8x64xf32>
    %cst_50 = arith.constant 1.000000e+00 : f32
    %178 = vector.broadcast %cst_50 : f32 to vector<8x64xf32>
    %179 = arith.addf %178, %177 : vector<8x64xf32>
    %180 = arith.mulf %169, %179 : vector<8x64xf32>
    %181 = arith.truncf %180 : vector<8x64xf32> to vector<8x64xbf16>
    %c0_51 = arith.constant 0 : index
    %c0_52 = arith.constant 0 : index
    %c0_53 = arith.constant 0 : index
    %182 = vector.load %arg6[%c0_51, %c0_52, %c0_53] : memref<2x64x32xbf16, #tpu.memory_space<vmem>>, vector<1x64x32xbf16>
    %183 = vector.shape_cast %182 : vector<1x64x32xbf16> to vector<64x32xbf16>
    %cst_54 = arith.constant dense<0.000000e+00> : vector<8x32xf32>
    %184 = tpu.matmul %181, %183, %cst_54 {dimension_numbers = #tpu.dot_dimension_numbers<[1], [0], [0], [1], [0, 0, 1, 1], [], []>} : vector<8x64xbf16>, vector<64x32xbf16>, vector<8x32xf32> -> vector<8x32xf32>
    %185 = vector.broadcast %39 : vector<1x32xf32> to vector<8x32xf32>
    %186 = arith.addf %184, %185 : vector<8x32xf32>
    %187 = arith.addf %161, %186 : vector<8x32xf32>
    %cst_55 = arith.constant dense<0.000000e+00> : vector<8xf32>
    %188 = vector.multi_reduction <add>, %187, %cst_55 [1] : vector<8x32xf32> to vector<8xf32>
    %189 = vector.shape_cast %188 : vector<8xf32> to vector<8x1xf32>
    %cst_56 = arith.constant 3.200000e+01 : f32
    %190 = vector.broadcast %cst_56 : f32 to vector<8x1xf32>
    %191 = arith.divf %189, %190 : vector<8x1xf32>
    %192 = vector.broadcast %191 : vector<8x1xf32> to vector<8x32xf32>
    %193 = arith.subf %187, %192 : vector<8x32xf32>
    %194 = arith.mulf %193, %193 : vector<8x32xf32>
    %cst_57 = arith.constant dense<0.000000e+00> : vector<8xf32>
    %195 = vector.multi_reduction <add>, %194, %cst_57 [1] : vector<8x32xf32> to vector<8xf32>
    %196 = vector.shape_cast %195 : vector<8xf32> to vector<8x1xf32>
    %cst_58 = arith.constant 3.200000e+01 : f32
    %197 = vector.broadcast %cst_58 : f32 to vector<8x1xf32>
    %198 = arith.divf %196, %197 : vector<8x1xf32>
    %199 = vector.broadcast %191 : vector<8x1xf32> to vector<8x32xf32>
    %200 = arith.subf %187, %199 : vector<8x32xf32>
    %cst_59 = arith.constant 9.99999996E-13 : f32
    %201 = vector.broadcast %cst_59 : f32 to vector<8x1xf32>
    %202 = arith.addf %198, %201 : vector<8x1xf32>
    %203 = math.rsqrt %202 : vector<8x1xf32>
    %204 = vector.broadcast %203 : vector<8x1xf32> to vector<8x32xf32>
    %205 = arith.mulf %200, %204 : vector<8x32xf32>
    %206 = vector.broadcast %40 : vector<1x32xf32> to vector<8x32xf32>
    %207 = arith.mulf %205, %206 : vector<8x32xf32>
    %208 = vector.broadcast %41 : vector<1x32xf32> to vector<8x32xf32>
    %209 = arith.addf %207, %208 : vector<8x32xf32>
    %210 = vector.extract_strided_slice %4 {offsets = [10, 0], sizes = [1, 96], strides = [1, 1]} : vector<18x128xf32> to vector<1x96xf32>
    %211 = vector.extract_strided_slice %4 {offsets = [11, 0], sizes = [1, 32], strides = [1, 1]} : vector<18x128xf32> to vector<1x32xf32>
    %212 = vector.extract_strided_slice %4 {offsets = [12, 0], sizes = [1, 32], strides = [1, 1]} : vector<18x128xf32> to vector<1x32xf32>
    %213 = vector.extract_strided_slice %4 {offsets = [13, 0], sizes = [1, 32], strides = [1, 1]} : vector<18x128xf32> to vector<1x32xf32>
    %214 = vector.extract_strided_slice %4 {offsets = [14, 0], sizes = [1, 64], strides = [1, 1]} : vector<18x128xf32> to vector<1x64xf32>
    %215 = vector.extract_strided_slice %4 {offsets = [15, 0], sizes = [1, 32], strides = [1, 1]} : vector<18x128xf32> to vector<1x32xf32>
    %216 = vector.extract_strided_slice %4 {offsets = [16, 0], sizes = [1, 32], strides = [1, 1]} : vector<18x128xf32> to vector<1x32xf32>
    %217 = vector.extract_strided_slice %4 {offsets = [17, 0], sizes = [1, 32], strides = [1, 1]} : vector<18x128xf32> to vector<1x32xf32>
    %218 = arith.truncf %209 : vector<8x32xf32> to vector<8x32xbf16>
    %c1 = arith.constant 1 : index
    %c0_60 = arith.constant 0 : index
    %c0_61 = arith.constant 0 : index
    %219 = vector.load %arg3[%c1, %c0_60, %c0_61] : memref<2x32x96xbf16, #tpu.memory_space<vmem>>, vector<1x32x96xbf16>
    %220 = vector.shape_cast %219 : vector<1x32x96xbf16> to vector<32x96xbf16>
    %cst_62 = arith.constant dense<0.000000e+00> : vector<8x96xf32>
    %221 = tpu.matmul %218, %220, %cst_62 {dimension_numbers = #tpu.dot_dimension_numbers<[1], [0], [0], [1], [0, 0, 1, 1], [], []>} : vector<8x32xbf16>, vector<32x96xbf16>, vector<8x96xf32> -> vector<8x96xf32>
    %222 = vector.broadcast %210 : vector<1x96xf32> to vector<8x96xf32>
    %223 = arith.addf %221, %222 : vector<8x96xf32>
    %224 = vector.extract_strided_slice %223 {offsets = [0, 0], sizes = [8, 8], strides = [1, 1]} : vector<8x96xf32> to vector<8x8xf32>
    %225 = arith.truncf %224 : vector<8x8xf32> to vector<8x8xbf16>
    %226 = vector.extract_strided_slice %223 {offsets = [0, 32], sizes = [8, 8], strides = [1, 1]} : vector<8x96xf32> to vector<8x8xf32>
    %227 = arith.truncf %226 : vector<8x8xf32> to vector<8x8xbf16>
    %228 = vector.extract_strided_slice %223 {offsets = [0, 64], sizes = [8, 8], strides = [1, 1]} : vector<8x96xf32> to vector<8x8xf32>
    %229 = arith.truncf %228 : vector<8x8xf32> to vector<8x8xbf16>
    %cst_63 = arith.constant dense<0.000000e+00> : vector<8x8xf32>
    %230 = tpu.matmul %225, %227, %cst_63 {dimension_numbers = #tpu.dot_dimension_numbers<[1], [1], [0], [0], [0, 0, 1, 0], [], []>} : vector<8x8xbf16>, vector<8x8xbf16>, vector<8x8xf32> -> vector<8x8xf32>
    %231 = vector.broadcast %9 : vector<1x8xf32> to vector<8x8xf32>
    %232 = arith.addf %230, %231 : vector<8x8xf32>
    %cst_64 = arith.constant dense<0xFF800000> : vector<8xf32>
    %233 = vector.multi_reduction <maximumf>, %232, %cst_64 [1] : vector<8x8xf32> to vector<8xf32>
    %234 = vector.shape_cast %233 : vector<8xf32> to vector<8x1xf32>
    %235 = vector.broadcast %234 : vector<8x1xf32> to vector<8x8xf32>
    %236 = arith.subf %232, %235 : vector<8x8xf32>
    %237 = math.exp %236 : vector<8x8xf32>
    %cst_65 = arith.constant dense<0.000000e+00> : vector<8xf32>
    %238 = vector.multi_reduction <add>, %237, %cst_65 [1] : vector<8x8xf32> to vector<8xf32>
    %239 = vector.shape_cast %238 : vector<8xf32> to vector<8x1xf32>
    %240 = tpu.reciprocal %239 {approx = true} : vector<8x1xf32> -> vector<8x1xf32>
    %241 = vector.broadcast %240 : vector<8x1xf32> to vector<8x8xf32>
    %242 = arith.mulf %237, %241 : vector<8x8xf32>
    %243 = arith.truncf %242 : vector<8x8xf32> to vector<8x8xbf16>
    %cst_66 = arith.constant dense<0.000000e+00> : vector<8x8xf32>
    %244 = tpu.matmul %243, %229, %cst_66 {dimension_numbers = #tpu.dot_dimension_numbers<[1], [0], [0], [1], [0, 0, 1, 1], [], []>} : vector<8x8xbf16>, vector<8x8xbf16>, vector<8x8xf32> -> vector<8x8xf32>
    %245 = vector.extract_strided_slice %223 {offsets = [0, 8], sizes = [8, 8], strides = [1, 1]} : vector<8x96xf32> to vector<8x8xf32>
    %246 = arith.truncf %245 : vector<8x8xf32> to vector<8x8xbf16>
    %247 = vector.extract_strided_slice %223 {offsets = [0, 40], sizes = [8, 8], strides = [1, 1]} : vector<8x96xf32> to vector<8x8xf32>
    %248 = arith.truncf %247 : vector<8x8xf32> to vector<8x8xbf16>
    %249 = vector.extract_strided_slice %223 {offsets = [0, 72], sizes = [8, 8], strides = [1, 1]} : vector<8x96xf32> to vector<8x8xf32>
    %250 = arith.truncf %249 : vector<8x8xf32> to vector<8x8xbf16>
    %cst_67 = arith.constant dense<0.000000e+00> : vector<8x8xf32>
    %251 = tpu.matmul %246, %248, %cst_67 {dimension_numbers = #tpu.dot_dimension_numbers<[1], [1], [0], [0], [0, 0, 1, 0], [], []>} : vector<8x8xbf16>, vector<8x8xbf16>, vector<8x8xf32> -> vector<8x8xf32>
    %252 = vector.broadcast %9 : vector<1x8xf32> to vector<8x8xf32>
    %253 = arith.addf %251, %252 : vector<8x8xf32>
    %cst_68 = arith.constant dense<0xFF800000> : vector<8xf32>
    %254 = vector.multi_reduction <maximumf>, %253, %cst_68 [1] : vector<8x8xf32> to vector<8xf32>
    %255 = vector.shape_cast %254 : vector<8xf32> to vector<8x1xf32>
    %256 = vector.broadcast %255 : vector<8x1xf32> to vector<8x8xf32>
    %257 = arith.subf %253, %256 : vector<8x8xf32>
    %258 = math.exp %257 : vector<8x8xf32>
    %cst_69 = arith.constant dense<0.000000e+00> : vector<8xf32>
    %259 = vector.multi_reduction <add>, %258, %cst_69 [1] : vector<8x8xf32> to vector<8xf32>
    %260 = vector.shape_cast %259 : vector<8xf32> to vector<8x1xf32>
    %261 = tpu.reciprocal %260 {approx = true} : vector<8x1xf32> -> vector<8x1xf32>
    %262 = vector.broadcast %261 : vector<8x1xf32> to vector<8x8xf32>
    %263 = arith.mulf %258, %262 : vector<8x8xf32>
    %264 = arith.truncf %263 : vector<8x8xf32> to vector<8x8xbf16>
    %cst_70 = arith.constant dense<0.000000e+00> : vector<8x8xf32>
    %265 = tpu.matmul %264, %250, %cst_70 {dimension_numbers = #tpu.dot_dimension_numbers<[1], [0], [0], [1], [0, 0, 1, 1], [], []>} : vector<8x8xbf16>, vector<8x8xbf16>, vector<8x8xf32> -> vector<8x8xf32>
    %266 = vector.extract_strided_slice %223 {offsets = [0, 16], sizes = [8, 8], strides = [1, 1]} : vector<8x96xf32> to vector<8x8xf32>
    %267 = arith.truncf %266 : vector<8x8xf32> to vector<8x8xbf16>
    %268 = vector.extract_strided_slice %223 {offsets = [0, 48], sizes = [8, 8], strides = [1, 1]} : vector<8x96xf32> to vector<8x8xf32>
    %269 = arith.truncf %268 : vector<8x8xf32> to vector<8x8xbf16>
    %270 = vector.extract_strided_slice %223 {offsets = [0, 80], sizes = [8, 8], strides = [1, 1]} : vector<8x96xf32> to vector<8x8xf32>
    %271 = arith.truncf %270 : vector<8x8xf32> to vector<8x8xbf16>
    %cst_71 = arith.constant dense<0.000000e+00> : vector<8x8xf32>
    %272 = tpu.matmul %267, %269, %cst_71 {dimension_numbers = #tpu.dot_dimension_numbers<[1], [1], [0], [0], [0, 0, 1, 0], [], []>} : vector<8x8xbf16>, vector<8x8xbf16>, vector<8x8xf32> -> vector<8x8xf32>
    %273 = vector.broadcast %9 : vector<1x8xf32> to vector<8x8xf32>
    %274 = arith.addf %272, %273 : vector<8x8xf32>
    %cst_72 = arith.constant dense<0xFF800000> : vector<8xf32>
    %275 = vector.multi_reduction <maximumf>, %274, %cst_72 [1] : vector<8x8xf32> to vector<8xf32>
    %276 = vector.shape_cast %275 : vector<8xf32> to vector<8x1xf32>
    %277 = vector.broadcast %276 : vector<8x1xf32> to vector<8x8xf32>
    %278 = arith.subf %274, %277 : vector<8x8xf32>
    %279 = math.exp %278 : vector<8x8xf32>
    %cst_73 = arith.constant dense<0.000000e+00> : vector<8xf32>
    %280 = vector.multi_reduction <add>, %279, %cst_73 [1] : vector<8x8xf32> to vector<8xf32>
    %281 = vector.shape_cast %280 : vector<8xf32> to vector<8x1xf32>
    %282 = tpu.reciprocal %281 {approx = true} : vector<8x1xf32> -> vector<8x1xf32>
    %283 = vector.broadcast %282 : vector<8x1xf32> to vector<8x8xf32>
    %284 = arith.mulf %279, %283 : vector<8x8xf32>
    %285 = arith.truncf %284 : vector<8x8xf32> to vector<8x8xbf16>
    %cst_74 = arith.constant dense<0.000000e+00> : vector<8x8xf32>
    %286 = tpu.matmul %285, %271, %cst_74 {dimension_numbers = #tpu.dot_dimension_numbers<[1], [0], [0], [1], [0, 0, 1, 1], [], []>} : vector<8x8xbf16>, vector<8x8xbf16>, vector<8x8xf32> -> vector<8x8xf32>
    %287 = vector.extract_strided_slice %223 {offsets = [0, 24], sizes = [8, 8], strides = [1, 1]} : vector<8x96xf32> to vector<8x8xf32>
    %288 = arith.truncf %287 : vector<8x8xf32> to vector<8x8xbf16>
    %289 = vector.extract_strided_slice %223 {offsets = [0, 56], sizes = [8, 8], strides = [1, 1]} : vector<8x96xf32> to vector<8x8xf32>
    %290 = arith.truncf %289 : vector<8x8xf32> to vector<8x8xbf16>
    %291 = vector.extract_strided_slice %223 {offsets = [0, 88], sizes = [8, 8], strides = [1, 1]} : vector<8x96xf32> to vector<8x8xf32>
    %292 = arith.truncf %291 : vector<8x8xf32> to vector<8x8xbf16>
    %cst_75 = arith.constant dense<0.000000e+00> : vector<8x8xf32>
    %293 = tpu.matmul %288, %290, %cst_75 {dimension_numbers = #tpu.dot_dimension_numbers<[1], [1], [0], [0], [0, 0, 1, 0], [], []>} : vector<8x8xbf16>, vector<8x8xbf16>, vector<8x8xf32> -> vector<8x8xf32>
    %294 = vector.broadcast %9 : vector<1x8xf32> to vector<8x8xf32>
    %295 = arith.addf %293, %294 : vector<8x8xf32>
    %cst_76 = arith.constant dense<0xFF800000> : vector<8xf32>
    %296 = vector.multi_reduction <maximumf>, %295, %cst_76 [1] : vector<8x8xf32> to vector<8xf32>
    %297 = vector.shape_cast %296 : vector<8xf32> to vector<8x1xf32>
    %298 = vector.broadcast %297 : vector<8x1xf32> to vector<8x8xf32>
    %299 = arith.subf %295, %298 : vector<8x8xf32>
    %300 = math.exp %299 : vector<8x8xf32>
    %cst_77 = arith.constant dense<0.000000e+00> : vector<8xf32>
    %301 = vector.multi_reduction <add>, %300, %cst_77 [1] : vector<8x8xf32> to vector<8xf32>
    %302 = vector.shape_cast %301 : vector<8xf32> to vector<8x1xf32>
    %303 = tpu.reciprocal %302 {approx = true} : vector<8x1xf32> -> vector<8x1xf32>
    %304 = vector.broadcast %303 : vector<8x1xf32> to vector<8x8xf32>
    %305 = arith.mulf %300, %304 : vector<8x8xf32>
    %306 = arith.truncf %305 : vector<8x8xf32> to vector<8x8xbf16>
    %cst_78 = arith.constant dense<0.000000e+00> : vector<8x8xf32>
    %307 = tpu.matmul %306, %292, %cst_78 {dimension_numbers = #tpu.dot_dimension_numbers<[1], [0], [0], [1], [0, 0, 1, 1], [], []>} : vector<8x8xbf16>, vector<8x8xbf16>, vector<8x8xf32> -> vector<8x8xf32>
    %308 = tpu.concatenate %244, %265, %286, %307 in 1 : vector<8x8xf32>, vector<8x8xf32>, vector<8x8xf32>, vector<8x8xf32> -> vector<8x32xf32>
    %309 = arith.truncf %308 : vector<8x32xf32> to vector<8x32xbf16>
    %c1_79 = arith.constant 1 : index
    %c0_80 = arith.constant 0 : index
    %c0_81 = arith.constant 0 : index
    %310 = vector.load %arg4[%c1_79, %c0_80, %c0_81] : memref<2x32x32xbf16, #tpu.memory_space<vmem>>, vector<1x32x32xbf16>
    %311 = vector.shape_cast %310 : vector<1x32x32xbf16> to vector<32x32xbf16>
    %cst_82 = arith.constant dense<0.000000e+00> : vector<8x32xf32>
    %312 = tpu.matmul %309, %311, %cst_82 {dimension_numbers = #tpu.dot_dimension_numbers<[1], [0], [0], [1], [0, 0, 1, 1], [], []>} : vector<8x32xbf16>, vector<32x32xbf16>, vector<8x32xf32> -> vector<8x32xf32>
    %313 = vector.broadcast %211 : vector<1x32xf32> to vector<8x32xf32>
    %314 = arith.addf %312, %313 : vector<8x32xf32>
    %315 = arith.addf %209, %314 : vector<8x32xf32>
    %cst_83 = arith.constant dense<0.000000e+00> : vector<8xf32>
    %316 = vector.multi_reduction <add>, %315, %cst_83 [1] : vector<8x32xf32> to vector<8xf32>
    %317 = vector.shape_cast %316 : vector<8xf32> to vector<8x1xf32>
    %cst_84 = arith.constant 3.200000e+01 : f32
    %318 = vector.broadcast %cst_84 : f32 to vector<8x1xf32>
    %319 = arith.divf %317, %318 : vector<8x1xf32>
    %320 = vector.broadcast %319 : vector<8x1xf32> to vector<8x32xf32>
    %321 = arith.subf %315, %320 : vector<8x32xf32>
    %322 = arith.mulf %321, %321 : vector<8x32xf32>
    %cst_85 = arith.constant dense<0.000000e+00> : vector<8xf32>
    %323 = vector.multi_reduction <add>, %322, %cst_85 [1] : vector<8x32xf32> to vector<8xf32>
    %324 = vector.shape_cast %323 : vector<8xf32> to vector<8x1xf32>
    %cst_86 = arith.constant 3.200000e+01 : f32
    %325 = vector.broadcast %cst_86 : f32 to vector<8x1xf32>
    %326 = arith.divf %324, %325 : vector<8x1xf32>
    %327 = vector.broadcast %319 : vector<8x1xf32> to vector<8x32xf32>
    %328 = arith.subf %315, %327 : vector<8x32xf32>
    %cst_87 = arith.constant 9.99999996E-13 : f32
    %329 = vector.broadcast %cst_87 : f32 to vector<8x1xf32>
    %330 = arith.addf %326, %329 : vector<8x1xf32>
    %331 = math.rsqrt %330 : vector<8x1xf32>
    %332 = vector.broadcast %331 : vector<8x1xf32> to vector<8x32xf32>
    %333 = arith.mulf %328, %332 : vector<8x32xf32>
    %334 = vector.broadcast %212 : vector<1x32xf32> to vector<8x32xf32>
    %335 = arith.mulf %333, %334 : vector<8x32xf32>
    %336 = vector.broadcast %213 : vector<1x32xf32> to vector<8x32xf32>
    %337 = arith.addf %335, %336 : vector<8x32xf32>
    %338 = arith.truncf %337 : vector<8x32xf32> to vector<8x32xbf16>
    %c1_88 = arith.constant 1 : index
    %c0_89 = arith.constant 0 : index
    %c0_90 = arith.constant 0 : index
    %339 = vector.load %arg5[%c1_88, %c0_89, %c0_90] : memref<2x32x64xbf16, #tpu.memory_space<vmem>>, vector<1x32x64xbf16>
    %340 = vector.shape_cast %339 : vector<1x32x64xbf16> to vector<32x64xbf16>
    %cst_91 = arith.constant dense<0.000000e+00> : vector<8x64xf32>
    %341 = tpu.matmul %338, %340, %cst_91 {dimension_numbers = #tpu.dot_dimension_numbers<[1], [0], [0], [1], [0, 0, 1, 1], [], []>} : vector<8x32xbf16>, vector<32x64xbf16>, vector<8x64xf32> -> vector<8x64xf32>
    %342 = vector.broadcast %214 : vector<1x64xf32> to vector<8x64xf32>
    %343 = arith.addf %341, %342 : vector<8x64xf32>
    %cst_92 = arith.constant 5.000000e-01 : f32
    %344 = vector.broadcast %cst_92 : f32 to vector<8x64xf32>
    %345 = arith.mulf %344, %343 : vector<8x64xf32>
    %cst_93 = arith.constant 4.471500e-02 : f32
    %346 = vector.broadcast %cst_93 : f32 to vector<8x64xf32>
    %347 = arith.mulf %346, %343 : vector<8x64xf32>
    %348 = arith.mulf %347, %343 : vector<8x64xf32>
    %349 = arith.mulf %348, %343 : vector<8x64xf32>
    %350 = arith.addf %343, %349 : vector<8x64xf32>
    %cst_94 = arith.constant 0.797884583 : f32
    %351 = vector.broadcast %cst_94 : f32 to vector<8x64xf32>
    %352 = arith.mulf %351, %350 : vector<8x64xf32>
    %353 = math.tanh %352 : vector<8x64xf32>
    %cst_95 = arith.constant 1.000000e+00 : f32
    %354 = vector.broadcast %cst_95 : f32 to vector<8x64xf32>
    %355 = arith.addf %354, %353 : vector<8x64xf32>
    %356 = arith.mulf %345, %355 : vector<8x64xf32>
    %357 = arith.truncf %356 : vector<8x64xf32> to vector<8x64xbf16>
    %c1_96 = arith.constant 1 : index
    %c0_97 = arith.constant 0 : index
    %c0_98 = arith.constant 0 : index
    %358 = vector.load %arg6[%c1_96, %c0_97, %c0_98] : memref<2x64x32xbf16, #tpu.memory_space<vmem>>, vector<1x64x32xbf16>
    %359 = vector.shape_cast %358 : vector<1x64x32xbf16> to vector<64x32xbf16>
    %cst_99 = arith.constant dense<0.000000e+00> : vector<8x32xf32>
    %360 = tpu.matmul %357, %359, %cst_99 {dimension_numbers = #tpu.dot_dimension_numbers<[1], [0], [0], [1], [0, 0, 1, 1], [], []>} : vector<8x64xbf16>, vector<64x32xbf16>, vector<8x32xf32> -> vector<8x32xf32>
    %361 = vector.broadcast %215 : vector<1x32xf32> to vector<8x32xf32>
    %362 = arith.addf %360, %361 : vector<8x32xf32>
    %363 = arith.addf %337, %362 : vector<8x32xf32>
    %cst_100 = arith.constant dense<0.000000e+00> : vector<8xf32>
    %364 = vector.multi_reduction <add>, %363, %cst_100 [1] : vector<8x32xf32> to vector<8xf32>
    %365 = vector.shape_cast %364 : vector<8xf32> to vector<8x1xf32>
    %cst_101 = arith.constant 3.200000e+01 : f32
    %366 = vector.broadcast %cst_101 : f32 to vector<8x1xf32>
    %367 = arith.divf %365, %366 : vector<8x1xf32>
    %368 = vector.broadcast %367 : vector<8x1xf32> to vector<8x32xf32>
    %369 = arith.subf %363, %368 : vector<8x32xf32>
    %370 = arith.mulf %369, %369 : vector<8x32xf32>
    %cst_102 = arith.constant dense<0.000000e+00> : vector<8xf32>
    %371 = vector.multi_reduction <add>, %370, %cst_102 [1] : vector<8x32xf32> to vector<8xf32>
    %372 = vector.shape_cast %371 : vector<8xf32> to vector<8x1xf32>
    %cst_103 = arith.constant 3.200000e+01 : f32
    %373 = vector.broadcast %cst_103 : f32 to vector<8x1xf32>
    %374 = arith.divf %372, %373 : vector<8x1xf32>
    %375 = vector.broadcast %367 : vector<8x1xf32> to vector<8x32xf32>
    %376 = arith.subf %363, %375 : vector<8x32xf32>
    %cst_104 = arith.constant 9.99999996E-13 : f32
    %377 = vector.broadcast %cst_104 : f32 to vector<8x1xf32>
    %378 = arith.addf %374, %377 : vector<8x1xf32>
    %379 = math.rsqrt %378 : vector<8x1xf32>
    %380 = vector.broadcast %379 : vector<8x1xf32> to vector<8x32xf32>
    %381 = arith.mulf %376, %380 : vector<8x32xf32>
    %382 = vector.broadcast %216 : vector<1x32xf32> to vector<8x32xf32>
    %383 = arith.mulf %381, %382 : vector<8x32xf32>
    %384 = vector.broadcast %217 : vector<1x32xf32> to vector<8x32xf32>
    %385 = arith.addf %383, %384 : vector<8x32xf32>
    %c0_105 = arith.constant 0 : index
    %c0_106 = arith.constant 0 : index
    %c0_107 = arith.constant 0 : index
    %386 = vector.load %arg8[%c0_105, %c0_106, %c0_107] : memref<1x8x32xf32, #tpu.memory_space<vmem>>, vector<1x8x32xf32>
    %387 = vector.shape_cast %386 : vector<1x8x32xf32> to vector<8x32xf32>
    %388 = vector.shape_cast %385 : vector<8x32xf32> to vector<1x8x32xf32>
    tpu.vector_store %arg8[%c0_105, %c0_106, %c0_107], %388 {strides = array<i32>} : memref<1x8x32xf32, #tpu.memory_space<vmem>>, vector<1x8x32xf32>,
    return
  }
  func.func @transform_0(%arg0: i32) -> (i32, i32, i32) {
    %c0_i32 = arith.constant 0 : i32
    %c0_i32_0 = arith.constant 0 : i32
    %c0_i32_1 = arith.constant 0 : i32
    return %arg0, %c0_i32, %c0_i32_0 : i32, i32, i32
  }
  func.func @transform_1(%arg0: i32) -> (i32, i32, i32) {
    %c0_i32 = arith.constant 0 : i32
    %c0_i32_0 = arith.constant 0 : i32
    %c0_i32_1 = arith.constant 0 : i32
    return %arg0, %c0_i32, %c0_i32_0 : i32, i32, i32
  }
  func.func @transform_2(%arg0: i32) -> (i32, i32, i32) {
    %c0_i32 = arith.constant 0 : i32
    %c0_i32_0 = arith.constant 0 : i32
    %c0_i32_1 = arith.constant 0 : i32
    %c0_i32_2 = arith.constant 0 : i32
    return %c0_i32, %c0_i32_0, %c0_i32_1 : i32, i32, i32
  }
  func.func @transform_3(%arg0: i32) -> (i32, i32, i32) {
    %c0_i32 = arith.constant 0 : i32
    %c0_i32_0 = arith.constant 0 : i32
    %c0_i32_1 = arith.constant 0 : i32
    %c0_i32_2 = arith.constant 0 : i32
    return %c0_i32, %c0_i32_0, %c0_i32_1 : i32, i32, i32
  }
  func.func @transform_4(%arg0: i32) -> (i32, i32, i32) {
    %c0_i32 = arith.constant 0 : i32
    %c0_i32_0 = arith.constant 0 : i32
    %c0_i32_1 = arith.constant 0 : i32
    %c0_i32_2 = arith.constant 0 : i32
    return %c0_i32, %c0_i32_0, %c0_i32_1 : i32, i32, i32
  }
  func.func @transform_5(%arg0: i32) -> (i32, i32, i32) {
    %c0_i32 = arith.constant 0 : i32
    %c0_i32_0 = arith.constant 0 : i32
    %c0_i32_1 = arith.constant 0 : i32
    %c0_i32_2 = arith.constant 0 : i32
    return %c0_i32, %c0_i32_0, %c0_i32_1 : i32, i32, i32
  }
  func.func @transform_6(%arg0: i32) -> (i32, i32) {
    %c0_i32 = arith.constant 0 : i32
    %c0_i32_0 = arith.constant 0 : i32
    %c0_i32_1 = arith.constant 0 : i32
    return %c0_i32, %c0_i32_0 : i32, i32
  }
  func.func @transform_7(%arg0: i32) -> (i32, i32, i32) {
    %c0_i32 = arith.constant 0 : i32
    %c0_i32_0 = arith.constant 0 : i32
    %c0_i32_1 = arith.constant 0 : i32
    return %arg0, %c0_i32, %c0_i32_0 : i32, i32, i32
  }
}

</mosaic_0001>

<bundles_post_ra>
// kernel: bert_encoder_forward.1
= control target key start
LH: loop header
LB: loop body
LE: loop exit
PB: predicated region body
PF: predicated region fallthrough
CT: control target
= control target key end

     0   :  { %12 = vsyncpa [#allocation3], 0  ;;  %s2992_s0 = inlined_call_operand.vmem [shape: f32[2,8,32], index: 0, kind: input, shape index: {}]   ;;  %s2993_s1 = inlined_call_operand.vmem [shape: f32[2,1,8], index: 1, kind: input, shape index: {}]   ;;  %s2994_s2 = inlined_call_operand.vmem [shape: bf16[2,32,96], index: 2, kind: input, shape index: {}]   ;;  %s2995_s3 = inlined_call_operand.vmem [shape: bf16[2,32,32], index: 3, kind: input, shape index: {}]   ;;  %s2996_s4 = inlined_call_operand.vmem [shape: bf16[2,32,64], index: 4, kind: input, shape index: {}]   ;;  %s2997_s5 = inlined_call_operand.vmem [shape: bf16[2,64,32], index: 5, kind: input, shape index: {}]   ;;  %s2998_s6 = inlined_call_operand.vmem [shape: f32[18,128], index: 6, kind: input, shape index: {}]   ;;  %s2999_s7 = inlined_call_operand.hbm [shape: f32[2,8,32], index: 7, kind: output, shape index: {}]  }
   0x1   :  { %14 = vsyncpa [#allocation3 + $0x1], 0  ;;  %s2531_s24 = smov 0   ;;  %s2533_s25 = smov 0  }
   0x2   :  { %s2535_s26 = smov 0   ;;  %s2537_s27 = smov 0  }
   0x3 LB: > { %s2552_s28 = sadd.s32 4294967295, %s2471_s27   ;;  %s1987_s29 = sadd.s32 4294967294, %s2471_s27   ;;  %s2471_s27 = sphi %s2537_s27, %s3021_s27   ;;  %s2467_s26 = sphi %s2535_s26, %s3020_s26   ;;  %s2463_s25 = sphi %s2533_s25, %s3019_s25   ;;  %s2459_s24 = sphi %s2531_s24, %s3018_s24  }
   0x4   : > { %s2556_s30 = sadd.s32 1, %s2471_s27   ;;  %s184_s8 = sadd.s32 1, %s2467_s26 }
   0x5   : > { %s181_s9 = ssub.s32 %s2471_s27, %s2556_s30  ;;  %p194_p0 = scmp.ne.s32.totalorder %s2467_s26, %s2463_s25 }
   0x6   : > { %p182_p1 = scmp.eq.s32.totalorder %s181_s9, 0  ;;  %p195_p2 = scmp.eq.s32.totalorder %s2552_s28, 1 }
   0x7   : > { %p200_p3 = scmp.ne.s32.totalorder %s2463_s25, %s2459_s24  ;;  %p201_p4 = scmp.eq.s32.totalorder %s1987_s29, 1 }
   0x8   : > { %s2567_s10 = scalar_select %p182_p1, %s2467_s26, %s184_s8  }
   0x9   : > { %p2569_p5 = por %p195_p2, %p194_p0  ;;  %p2573_p6 = por %p201_p4, %p200_p3 }
   0xa   : > { %p1990_p7 = scmp.ge.s32.totalorder %s2471_s27, 1  ;;  %p247_p8 = scmp.lt.s32.totalorder %s2471_s27, 3 }
   0xc   : > { %p248_p9 = pnand %p1990_p7, %p247_p8 }
   0xd   : > { %p281_p10 = scmp.lt.s32.totalorder (!%p248_p9), %s2552_s28, 1  ;;  %s2475_s29 = smov (!%p248_p9), 120  }
   0xe   : > { %251 = sbr.rel (%p248_p9) target bundleno = 5225 (0x1469), region = 48  ;;  %s2476_s8 = smov (!%p248_p9), 96  }
   0xf   : > { %s2477_s9 = smov (!%p248_p9), 88   ;;  %s2479_s15 = smov (!%p248_p9), 112  }
  0x10   : > { %s2480_s16 = smov (!%p248_p9), 72   ;;  %s3002_s21 = smov (!%p248_p9), 56  }
  0x11   : > { %s3001_s22 = smov (!%p248_p9), 48   ;;  %s3000_s23 = smov (!%p248_p9), 40  }
  0x12   : > { %s3005_s18 = smov (!%p248_p9), 8   ;;  %s3003_s19 = smov (!%p248_p9), 24  }
  0x13   : > { %s2581_s13 = scalar_select %p281_p10, %s2552_s28, 1  ;;  %vm296_vm0 = vcmask 261120   ;;  %v2345_v7 = vld [vmem:[%s2994_s2 + $0x8] sm:$0xff]   ;;  %v2473_v8 = vmov 0.0   ;;  %vm2474_vm1 = vmmov 0   ;;  %v2346_v9 = vld [vmem:[%s2994_s2] sm:$0xff]   ;;  %v311_v13 = vlaneseq }
  0x14   : > { %2121 = vmatprep.subr.bf16.mxu1 %v2473_v8  ;;  %2125 = vmatprep.mubr.msk.bf16.mxu1 %vm2474_vm1, %v2473_v8  ;;  %v2611_v16 = vld [vmem:[%s2998_s6] sm:$0xff]  ;;  %vm395_vm2 = vcmask 64512   ;;  %v2482_v45 = vmov -1e+09   ;;  %vm459_vm4 = vcmask 1043456   ;;  %vm846_vm5 = vcmask 130048  }
  0x15   : > { %s1992_s14 = sshll.u32 %s2581_s13, 3  ;;  %2122 = vmatpush3.bf16.msra.mxu1 %v2345_v7  ;;  %2135 = vmatprep.subr.bf16.mxu0 %v2473_v8  ;;  %v2603_v14 = vshrl.u32 %v311_v13, 7  ;;  %s287_s20 = scalar_lea.vmem %s2993_s1, %s2581_s13  ;;  %vm848_vm6 = vcmask 195584   ;;  %vm1048_vm7 = vcmask 523264  }
  0x16   : > { %s284_s17 = scalar_lea.vmem %s2992_s0, %s1992_s14  ;;  %2123 = vmatprep.subr.bf16.mxu1 %v2473_v8  ;;  %2137 = vmatprep.mubr.msk.bf16.mxu0 %vm2474_vm1, %v2473_v8  ;;  %s2478_s14 = smov 80   ;;  %v290_v44 = vld [vmem:[%s287_s20] sm:$0x1] }
  0x17   : > { %v289_v0 = vld [vmem:[%s284_s17] sm:$0xff]  ;;  %v2606_v15 = vsub.s32 0, %v2603_v14  ;;  %v2614_v17 = vsub.s32 1, %v2603_v14  ;;  %v328_v25 = vsub.s32 2, %v2603_v14  ;;  %s3007_s17 = smov 104   ;;  %vm294_vm3 = vcmp.gt.f32.partialorder %v290_v44, 0.5 }
  0x18   : > { %v297_v1 = vsel %vm296_vm0, %v289_v0, 0.0  ;;  %v295_v46 = vsel %vm294_vm3, 0.0, %v2482_v45  ;;  %s3006_s13 = smov 64  }
  0x19   : > { %298 = vadd.xlane.f32.xlu0 %v297_v1  ;;  %2124 = vmatpush3.bf16.msra.mxu1 %v2346_v9  ;;  %v314_v18 = vrot.slane %v2611_v16, %v2606_v15  ;;  %v319_v21 = vrot.slane %v2611_v16, %v2614_v17  ;;  %v329_v26 = vrot.slane %v2611_v16, %v328_v25 }
  0x1a   : > { %2129 = vmatprep.subr.bf16.mxu1 %v2473_v8  ;;  %v2673_v47 = vrot.slane %v295_v46, %v2606_v15 }
  0xa2   : > { %v299_v2 = vpop.xlane.xlu0 %298 }
  0xa3   : > { %v301_v3 = vmul.f32 0.03125, %v299_v2 }
  0xa5   : > { %v302_v4 = vsub.f32 %v289_v0, %v301_v3 }
  0xa7   : > { %v303_v5 = vmul.f32 %v302_v4, %v302_v4 }
  0xa9   : > { %v304_v6 = vsel %vm296_vm0, %v303_v5, 0.0 }
  0xaa   : > { %305 = vadd.xlane.f32.xlu0 %v304_v6 }
 0x133   : > { %v306_v10 = vpop.xlane.xlu0 %305 }
 0x134   : > { %v307_v11 = vmul.f32 0.03125, %v306_v10 }
 0x136   : > { %v308_v12 = vadd.f32 1e-12, %v307_v11 }
 0x138   : > { %2365 = vrsqrt.f32 %v308_v12 }
 0x145   : > { %v2366_v19 = vpop.eup %2365 }
 0x146   : > { %v310_v20 = vmul.f32 %v2366_v19, %v302_v4 }
 0x148   : > { %v315_v22 = vmul.f32 %v314_v18, %v310_v20 }
 0x14a   : > { %v2620_v23 = vadd.f32 %v319_v21, %v315_v22 }
 0x14c   : > { %v321_v24 = vpack.c.bf16 %v2620_v23, %v2620_v23 }
 0x14e   : > { %2126 = vmatmul.mubr.msk.bf16.vlgmr.msra.gmra.mxu1 %vm296_vm0, %v321_v24 }
 0x14f   : > { %2131 = vmatprep.mubr.msk.bf16.mxu1 %vm2474_vm1, %v2473_v8 }
 0x20e   : > { %v379_v27 = vpop.f32.mrf.mxu1 }
 0x20f   : > { %v380_v28 = vadd.f32 %v379_v27, %v329_v26 }
 0x210   : > { %v2127_v29 = vpop.f32.mrf.mxu1 }
 0x211   : > { %v2631_v30 = vpack.c.bf16 %v380_v28, %v380_v28 }
 0x212   : > { %v382_v31 = vpop.f32.mrf.mxu1 }
 0x213   : > { %503 = vrot.lane.b32.xlu0 %v2631_v30, %s2475_s29  ;;  %393 = vrot.lane.b32.xlu1 %v2631_v30, %s2476_s8 }
 0x214   : > { %v2128_v32 = vpop.f32.mrf.mxu1 }
 0x217   : > { %505 = vrot.lane.b32.xlu1 %v2631_v30, %s2477_s9 }
 0x21b   : > { %615 = vrot.lane.b32.xlu1 %v2631_v30, %s2478_s14 }
 0x21f   : > { %613 = vrot.lane.b32.xlu1 %v2631_v30, %s2479_s15 }
 0x223   : > { %725 = vrot.lane.b32.xlu1 %v2631_v30, %s2480_s16 }
 0x227   : > { %723 = vrot.lane.b32.xlu1 %v2631_v30, %s3007_s17  ;;  %s2490_s17 = smov [#allocation2]  }
 0x285   : > { %v394_v33 = vpop.permute.xlu1 %393  ;;  %v504_v38 = vpop.permute.xlu0 %503 }
 0x286   : > { %v400_v34 = vsel %vm395_vm2, %v394_v33, 0 }
 0x287   : > { %2130 = vmatpush3.bf16.xpose.msra.mxu1 %v400_v34 }
 0x288   : > { %2141 = vmatprep.subr.bf16.mxu1 %v2473_v8 }
 0x289   : > { %v506_v35 = vpop.permute.xlu1 %505 }
 0x28a   : > { %v511_v36 = vsel %vm395_vm2, %v506_v35, 0 }
 0x28d   : > { %v616_v37 = vpop.permute.xlu1 %615 }
 0x28e   : > { %2132 = vmatmul.mubr.msk.bf16.vlgmr.msra.gmra.mxu1 %vm395_vm2, %v2631_v30  ;;  %v621_v40 = vsel %vm395_vm2, %v616_v37, 0 }
 0x28f   : > { %2142 = vmatpush3.bf16.xpose.msra.mxu1 %v511_v36  ;;  %2143 = vmatprep.mubr.msk.bf16.mxu1 %vm2474_vm1, %v2473_v8 }
 0x290   : > { %2153 = vmatprep.subr.bf16.mxu1 %v2473_v8 }
 0x291   : > { %v614_v39 = vpop.permute.xlu1 %613 }
 0x295   : > { %v726_v41 = vpop.permute.xlu1 %725 }
 0x296   : > { %2144 = vmatmul.mubr.msk.bf16.vlgmr.msra.gmra.mxu1 %vm395_vm2, %v504_v38  ;;  %v731_v42 = vsel %vm395_vm2, %v726_v41, 0 }
 0x297   : > { %2154 = vmatpush3.bf16.xpose.msra.mxu1 %v621_v40  ;;  %2155 = vmatprep.mubr.msk.bf16.mxu1 %vm2474_vm1, %v2473_v8 }
 0x298   : > { %2165 = vmatprep.subr.bf16.mxu1 %v2473_v8 }
 0x299   : > { %v724_v43 = vpop.permute.xlu1 %723 }
 0x29e   : > { %2156 = vmatmul.mubr.msk.bf16.vlgmr.msra.gmra.mxu1 %vm395_vm2, %v614_v39 }
 0x29f   : > { %2166 = vmatpush3.bf16.xpose.msra.mxu1 %v731_v42  ;;  %2167 = vmatprep.mubr.msk.bf16.mxu1 %vm2474_vm1, %v2473_v8 }
 0x2a0   : > { %2177 = vmatprep.subr.bf16.mxu1 %v2473_v8 }
 0x2a6   : > { %2168 = vmatmul.mubr.msk.bf16.vlgmr.msra.gmra.mxu1 %vm395_vm2, %v724_v43 }
 0x2a7   : > { %2181 = vmatprep.mubr.msk.bf16.mxu1 %vm2474_vm1, %v2473_v8 }
 0x34e   : > { %v436_v48 = vpop.f32.mrf.mxu1 }
 0x34f   : > { %v437_v49 = vadd.f32 %v436_v48, %v2673_v47 }
 0x350   : > { %v2133_v50 = vpop.f32.mrf.mxu1 }
 0x351   : > { %v442_v51 = vsel %vm395_vm2, %v437_v49, -inf }
 0x352   : > { %443 = vmax.xlane.f32.xlu1 %v442_v51  ;;  %v439_v52 = vpop.f32.mrf.mxu1 }
 0x354   : > { %v2134_v53 = vpop.f32.mrf.mxu1 }
 0x356   : > { %v547_v54 = vpop.f32.mrf.mxu1 }
 0x357   : > { %v548_v55 = vadd.f32 %v547_v54, %v2673_v47 }
 0x358   : > { %v2145_v56 = vpop.f32.mrf.mxu1 }
 0x359   : > { %v553_v57 = vsel %vm395_vm2, %v548_v55, -inf }
 0x35a   : > { %554 = vmax.xlane.f32.xlu0 %v553_v57  ;;  %v550_v58 = vpop.f32.mrf.mxu1 }
 0x35c   : > { %v2146_v59 = vpop.f32.mrf.mxu1 }
 0x35e   : > { %v657_v60 = vpop.f32.mrf.mxu1 }
 0x35f   : > { %v658_v61 = vadd.f32 %v657_v60, %v2673_v47 }
 0x360   : > { %v2157_v62 = vpop.f32.mrf.mxu1 }
 0x361   : > { %v663_v63 = vsel %vm395_vm2, %v658_v61, -inf }
 0x362   : > { %664 = vmax.xlane.f32.xlu1 %v663_v63  ;;  %v660_v0 = vpop.f32.mrf.mxu1 }
 0x364   : > { %v2158_v1 = vpop.f32.mrf.mxu1 }
 0x366   : > { %v767_v2 = vpop.f32.mrf.mxu1 }
 0x367   : > { %v768_v3 = vadd.f32 %v767_v2, %v2673_v47 }
 0x368   : > { %v2169_v4 = vpop.f32.mrf.mxu1 }
 0x369   : > { %v773_v5 = vsel %vm395_vm2, %v768_v3, -inf  ;;  %v2347_v4 = vld [vmem:[%s2995_s3 + $0x8] sm:$0xff]  }
 0x36a   : > { %774 = vmax.xlane.f32.xlu0 %v773_v5  ;;  %v770_v6 = vpop.f32.mrf.mxu1  ;;  %2178 = vmatpush3.bf16.msra.mxu1 %v2347_v4  ;;  %v2348_v5 = vld [vmem:[%s2995_s3] sm:$0xff]  }
 0x36b   : > { %2179 = vmatprep.subr.bf16.mxu1 %v2473_v8 }
 0x36c   : > { %v2170_v7 = vpop.f32.mrf.mxu1 }
 0x36e   : > { %2180 = vmatpush3.bf16.msra.mxu1 %v2348_v5 }
 0x36f   : > { %2193 = vmatprep.subr.bf16.mxu1 %v2473_v8 }
 0x3db   : > { %v444_v9 = vpop.xlane.xlu1 %443 }
 0x3dc   : > { %v445_v10 = vsub.f32 %v437_v49, %v444_v9 }
 0x3de   : > { %v446_v11 = vmul.f32 1.442695, %v445_v10 }
 0x3e0   : > { %2367 = vpow2.f32 %v446_v11 }
 0x3e3   : > { %v555_v12 = vpop.xlane.xlu0 %554 }
 0x3e4   : > { %v556_v13 = vsub.f32 %v548_v55, %v555_v12 }
 0x3e6   : > { %v557_v18 = vmul.f32 1.442695, %v556_v13 }
 0x3e8   : > { %2369 = vpow2.f32 %v557_v18 }
 0x3eb   : > { %v665_v31 = vpop.xlane.xlu1 %664 }
 0x3ec   : > { %v666_v32 = vsub.f32 %v658_v61, %v665_v31 }
 0x3ed   : > { %v2368_v19 = vpop.eup %2367 }
 0x3ee   : > { %v448_v20 = vsel %vm395_vm2, %v2368_v19, 0.0  ;;  %v667_v33 = vmul.f32 1.442695, %v666_v32 }
 0x3ef   : > { %449 = vadd.xlane.f32.xlu1 %v448_v20 }
 0x3f3   : > { %v775_v21 = vpop.xlane.xlu0 %774 }
 0x3f4   : > { %v776_v22 = vsub.f32 %v768_v3, %v775_v21 }
 0x3f5   : > { %v2370_v24 = vpop.eup %2369 }
 0x3f6   : > { %v777_v26 = vmul.f32 1.442695, %v776_v22  ;;  %v559_v27 = vsel %vm395_vm2, %v2370_v24, 0.0 }
 0x3f7   : > { %560 = vadd.xlane.f32.xlu0 %v559_v27 }
 0x3f8   : > { %2371 = vpow2.f32 %v777_v26 }
 0x3f9   : > { %2373 = vpow2.f32 %v667_v33 }
 0x400   : > { %454 = vrot.lane.b32.xlu1 %v2631_v30, %s3006_s13  ;;  %s2415_s13 = sshll.u32 %s2490_s17, 4  ;;  %s2416_s13 = int_to_ptr.vmem [resolvable:$false] %s2415_s13 }
 0x405   : > { %v2372_v28 = vpop.eup %2371 }
 0x406   : > { %v779_v29 = vsel %vm395_vm2, %v2372_v28, 0.0  ;;  %v2374_v34 = vpop.eup %2373 }
 0x407   : > { %780 = vadd.xlane.f32.xlu0 %v779_v29  ;;  %v669_v35 = vsel %vm395_vm2, %v2374_v34, 0.0 }
 0x41d   : > { %565 = vrot.lane.b32.xlu0 %v2631_v30, %s3002_s21  ;;  %s3004_s21 = smov 16  }
 0x424   : > { %670 = vadd.xlane.f32.xlu1 %v669_v35 }
 0x435   : > { %675 = vrot.lane.b32.xlu1 %v2631_v30, %s3001_s22 }
 0x439   : > { %785 = vrot.lane.b32.xlu1 %v2631_v30, %s3000_s23  ;;  %s3010_s23 = smov 104  }
 0x478   : > { %v450_v36 = vpop.xlane.xlu1 %449 }
 0x479   : > { %2375 = vrcp.f32 %v450_v36 }
 0x47c   : > { %v455_v37 = vpop.permute.xlu1 %454 }
 0x47d   : > { %v461_v38 = vsel %vm459_vm4, %v455_v37, 0 }
 0x47e   : > { %2136 = vmatpush3.bf16.msra.mxu0 %v461_v38 }
 0x47f   : > { %2147 = vmatprep.subr.bf16.mxu0 %v2473_v8 }
 0x480   : > { %v561_v39 = vpop.xlane.xlu0 %560 }
 0x481   : > { %2377 = vrcp.f32 %v561_v39 }
 0x486   : > { %v2376_v40 = vpop.eup %2375 }
 0x487   : > { %v452_v41 = vmul.f32 %v2376_v40, %v2368_v19 }
 0x489   : > { %v453_v42 = vpack.c.bf16 %v452_v41, %v452_v41 }
 0x48b   : > { %2138 = vmatmul.mubr.msk.bf16.vlgmr.msra.gmra.mxu0 %vm395_vm2, %v453_v42 }
 0x48c   : > { %2149 = vmatprep.mubr.msk.bf16.mxu0 %vm2474_vm1, %v2473_v8 }
 0x48e   : > { %v2378_v30 = vpop.eup %2377 }
 0x48f   : > { %v563_v44 = vmul.f32 %v2378_v30, %v2370_v24  ;;  %v2349_v30 = vld [vmem:[%s2996_s4 + $0x8] sm:$0xff]  }
 0x490   : > { %v781_v43 = vpop.xlane.xlu0 %780 }
 0x491   : > { %v564_v48 = vpack.c.bf16 %v563_v44, %v563_v44 }
 0x494   : > { %v566_v45 = vpop.permute.xlu0 %565 }
 0x495   : > { %v571_v46 = vsel %vm459_vm4, %v566_v45, 0 }
 0x496   : > { %2148 = vmatpush3.bf16.msra.mxu0 %v571_v46  ;;  %v930_v46 = vsub.s32 4, %v2603_v14 }
 0x497   : > { %2159 = vmatprep.subr.bf16.mxu0 %v2473_v8 }
 0x499   : > { %2150 = vmatmul.mubr.msk.bf16.vlgmr.msra.gmra.mxu0 %vm395_vm2, %v564_v48  ;;  %v935_v48 = vsub.s32 5, %v2603_v14 }
 0x49a   : > { %2161 = vmatprep.mubr.msk.bf16.mxu0 %vm2474_vm1, %v2473_v8 }
 0x4ad   : > { %v671_v49 = vpop.xlane.xlu1 %670 }
 0x4ae   : > { %2379 = vrcp.f32 %v671_v49  ;;  %v931_v49 = vrot.slane %v2611_v16, %v930_v46 }
 0x4af   : > { %2381 = vrcp.f32 %v781_v43 }
 0x4b1   : > { %v676_v50 = vpop.permute.xlu1 %675 }
 0x4b2   : > { %v681_v51 = vsel %vm459_vm4, %v676_v50, 0 }
 0x4b3   : > { %2160 = vmatpush3.bf16.msra.mxu0 %v681_v51 }
 0x4b4   : > { %2171 = vmatprep.subr.bf16.mxu0 %v2473_v8 }
 0x4b5   : > { %v786_v54 = vpop.permute.xlu1 %785 }
 0x4b6   : > { %v791_v57 = vsel %vm459_vm4, %v786_v54, 0 }
 0x4bb   : > { %v2380_v52 = vpop.eup %2379 }
 0x4bc   : > { %v673_v53 = vmul.f32 %v2380_v52, %v2374_v34  ;;  %v2382_v56 = vpop.eup %2381  ;;  %v936_v52 = vrot.slane %v2611_v16, %v935_v48 }
 0x4bd   : > { %v783_v58 = vmul.f32 %v2382_v56, %v2372_v28  ;;  %v857_v28 = vsub.s32 3, %v2603_v14  ;;  %v2351_v56 = vld [vmem:[%s2997_s5 + $0x18] sm:$0xff]  }
 0x4be   : > { %v674_v55 = vpack.c.bf16 %v673_v53, %v673_v53 }
 0x4bf   : > { %v784_v59 = vpack.c.bf16 %v783_v58, %v783_v58  ;;  %v858_v29 = vrot.slane %v2611_v16, %v857_v28  ;;  %v2353_v58 = vld [vmem:[%s2997_s5 + $0x8] sm:$0xff]  }
 0x4c0   : > { %2162 = vmatmul.mubr.msk.bf16.vlgmr.msra.gmra.mxu0 %vm395_vm2, %v674_v55 }
 0x4c1   : > { %2172 = vmatpush3.bf16.msra.mxu0 %v791_v57  ;;  %2173 = vmatprep.mubr.msk.bf16.mxu0 %vm2474_vm1, %v2473_v8  ;;  %v2352_v57 = vld [vmem:[%s2997_s5 + $0x10] sm:$0xff]  }
 0x4c2   : > { %2185 = vmatprep.subr.bf16.mxu0 %v2473_v8 }
 0x4c8   : > { %2174 = vmatmul.mubr.msk.bf16.vlgmr.msra.gmra.mxu0 %vm395_vm2, %v784_v59  ;;  %v2354_v59 = vld [vmem:[%s2997_s5] sm:$0xff]  }
 0x4c9   : > { %2189 = vmatprep.mubr.msk.bf16.mxu0 %vm2474_vm1, %v2473_v8  ;;  %2186 = vmatpush3.bf16.msra.mxu0 %v2349_v30 }
 0x4ca   : > { %2187 = vmatprep.subr.bf16.mxu0 %v2473_v8 }
 0x54b   : > { %v497_v60 = vpop.f32.mrf.mxu0 }
 0x54d   : > { %v2139_v61 = vpop.f32.mrf.mxu0 }
 0x54f   : > { %v500_v62 = vpop.f32.mrf.mxu0 }
 0x551   : > { %v2140_v63 = vpop.f32.mrf.mxu0 }
 0x559   : > { %v607_v0 = vpop.f32.mrf.mxu0 }
 0x55a   : > { %834 = vrot.lane.b32.xlu0 %v607_v0, %s3005_s18  ;;  %s3017_s18 = smov 24  }
 0x55b   : > { %v2151_v1 = vpop.f32.mrf.mxu0 }
 0x55d   : > { %v610_v2 = vpop.f32.mrf.mxu0 }
 0x55f   : > { %v2152_v3 = vpop.f32.mrf.mxu0 }
 0x580   : > { %v717_v6 = vpop.f32.mrf.mxu0 }
 0x581   : > { %838 = vrot.lane.b32.xlu1 %v717_v6, %s3004_s21  ;;  %s3016_s21 = smov 16  }
 0x582   : > { %v2163_v7 = vpop.f32.mrf.mxu0 }
 0x584   : > { %v720_v9 = vpop.f32.mrf.mxu0 }
 0x586   : > { %v2164_v10 = vpop.f32.mrf.mxu0 }
 0x588   : > { %v827_v11 = vpop.f32.mrf.mxu0 }
 0x589   : > { %842 = vrot.lane.b32.xlu0 %v827_v11, %s3003_s19 }
 0x58a   : > { %v2175_v12 = vpop.f32.mrf.mxu0 }
 0x58c   : > { %v830_v13 = vpop.f32.mrf.mxu0 }
 0x58e   : > { %v2176_v18 = vpop.f32.mrf.mxu0 }
 0x58f   : > { %v1022_v18 = vsub.s32 7, %v2603_v14 }
 0x5cc   : > { %v835_v19 = vpop.permute.xlu0 %834 }
 0x5cd   : > { %v845_v21 = vsel %vm395_vm2, %v497_v60, %v835_v19  ;;  %v945_v60 = vsub.s32 6, %v2603_v14  ;;  %v1023_v19 = vrot.slane %v2611_v16, %v1022_v18 }
 0x5cf   : > { %v946_v61 = vrot.slane %v2611_v16, %v945_v60  ;;  %v2355_v16 = vld [vmem:[%s2994_s2 + $0x18] sm:$0xff]  }
 0x5f3   : > { %v839_v20 = vpop.permute.xlu1 %838 }
 0x5f4   : > { %v847_v22 = vsel %vm846_vm5, %v845_v21, %v839_v20 }
 0x5fb   : > { %v843_v24 = vpop.permute.xlu0 %842 }
 0x5fc   : > { %v849_v26 = vsel %vm848_vm6, %v847_v22, %v843_v24 }
 0x5fd   : > { %v850_v27 = vpack.c.bf16 %v849_v26, %v849_v26 }
 0x5ff   : > { %2182 = vmatmul.mubr.msk.bf16.vlgmr.msra.gmra.mxu1 %vm296_vm0, %v850_v27 }
 0x600   : > { %2201 = vmatprep.mubr.msk.bf16.mxu1 %vm2474_vm1, %v2473_v8  ;;  %2194 = vmatpush3.bf16.msra.mxu1 %v2351_v56 }
 0x601   : > { %2195 = vmatprep.subr.bf16.mxu1 %v2473_v8 }
 0x604   : > { %2196 = vmatpush3.bf16.msra.mxu1 %v2352_v57 }
 0x605   : > { %2197 = vmatprep.subr.bf16.mxu1 %v2473_v8 }
 0x608   : > { %2198 = vmatpush3.bf16.msra.mxu1 %v2353_v58 }
 0x609   : > { %2199 = vmatprep.subr.bf16.mxu1 %v2473_v8 }
 0x60c   : > { %2200 = vmatpush3.bf16.msra.mxu1 %v2354_v59 }
 0x60d   : > { %2219 = vmatprep.subr.bf16.mxu1 %v2473_v8 }
 0x6bf   : > { %v908_v31 = vpop.f32.mrf.mxu1 }
 0x6c0   : > { %v909_v32 = vadd.f32 %v908_v31, %v858_v29 }
 0x6c1   : > { %v2183_v33 = vpop.f32.mrf.mxu1 }
 0x6c2   : > { %v914_v34 = vadd.f32 %v909_v32, %v2620_v23  ;;  %v2350_v23 = vld [vmem:[%s2996_s4] sm:$0xff]  }
 0x6c3   : > { %v911_v35 = vpop.f32.mrf.mxu1  ;;  %2188 = vmatpush3.bf16.msra.mxu0 %v2350_v23 }
 0x6c4   : > { %v915_v36 = vsel %vm296_vm0, %v914_v34, 0.0  ;;  %2205 = vmatprep.subr.bf16.mxu0 %v2473_v8 }
 0x6c5   : > { %916 = vadd.xlane.f32.xlu1 %v915_v36  ;;  %v2184_v37 = vpop.f32.mrf.mxu1  ;;  %v2356_v36 = vld [vmem:[%s2994_s2 + $0x10] sm:$0xff]  }
 0x74e   : > { %v917_v38 = vpop.xlane.xlu1 %916 }
 0x74f   : > { %v918_v39 = vmul.f32 0.03125, %v917_v38 }
 0x751   : > { %v919_v40 = vsub.f32 %v914_v34, %v918_v39 }
 0x753   : > { %v920_v41 = vmul.f32 %v919_v40, %v919_v40 }
 0x755   : > { %v921_v42 = vsel %vm296_vm0, %v920_v41, 0.0 }
 0x756   : > { %922 = vadd.xlane.f32.xlu0 %v921_v42 }
 0x7df   : > { %v923_v43 = vpop.xlane.xlu0 %922 }
 0x7e0   : > { %v924_v44 = vmul.f32 0.03125, %v923_v43 }
 0x7e2   : > { %v925_v45 = vadd.f32 1e-12, %v924_v44 }
 0x7e4   : > { %2383 = vrsqrt.f32 %v925_v45 }
 0x7f1   : > { %v2384_v50 = vpop.eup %2383 }
 0x7f2   : > { %v927_v51 = vmul.f32 %v2384_v50, %v919_v40  ;;  %v2798_v40 = vld [vmem:[%s2998_s6 + $0x8] sm:$0xff] }
 0x7f3   : > { %v1109_v41 = vrot.slane %v2798_v40, %v2606_v15  ;;  %v1114_v23 = vrot.slane %v2798_v40, %v2614_v17 }
 0x7f4   : > { %v932_v53 = vmul.f32 %v931_v49, %v927_v51  ;;  %v1125_v49 = vrot.slane %v2798_v40, %v328_v25 }
 0x7f6   : > { %v937_v54 = vadd.f32 %v936_v52, %v932_v53 }
 0x7f8   : > { %v938_v55 = vpack.c.bf16 %v937_v54, %v937_v54 }
 0x7fa   : > { %2190 = vmatmul.mubr.msk.bf16.vlgmr.msra.gmra.mxu0 %vm296_vm0, %v938_v55 }
 0x7fb   : > { %2209 = vmatprep.mubr.msk.bf16.mxu0 %vm2474_vm1, %v2473_v8  ;;  %2206 = vmatpush3.bf16.msra.mxu0 %v2355_v16 }
 0x7fc   : > { %2207 = vmatprep.subr.bf16.mxu0 %v2473_v8 }
 0x7ff   : > { %2208 = vmatpush3.bf16.msra.mxu0 %v2356_v36 }
 0x800   : > { %2213 = vmatprep.subr.bf16.mxu0 %v2473_v8 }
 0x8ba   : > { %v996_v62 = vpop.f32.mrf.mxu0 }
 0x8bb   : > { %v997_v63 = vadd.f32 %v996_v62, %v946_v61 }
 0x8bc   : > { %v2191_v0 = vpop.f32.mrf.mxu0 }
 0x8bd   : > { %v1003_v1 = vmul.f32 0.044715, %v997_v63  ;;  %v1002_v10 = vmul.f32 0.5, %v997_v63 }
 0x8be   : > { %v999_v2 = vpop.f32.mrf.mxu0 }
 0x8bf   : > { %v1004_v3 = vmul.f32 %v1003_v1, %v997_v63 }
 0x8c0   : > { %v2192_v4 = vpop.f32.mrf.mxu0 }
 0x8c1   : > { %v1005_v5 = vmul.f32 %v1004_v3, %v997_v63 }
 0x8c3   : > { %v1006_v6 = vadd.f32 %v1005_v5, %v997_v63 }
 0x8c5   : > { %v1007_v7 = vmul.f32 0.7978846, %v1006_v6 }
 0x8c7   : > { %2385 = vtanh.f32 %v1007_v7 }
 0x8d4   : > { %v2386_v9 = vpop.eup %2385 }
 0x8d5   : > { %v1009_v11 = vadd.f32 1.0, %v2386_v9 }
 0x8d7   : > { %v1010_v12 = vmul.f32 %v1009_v11, %v1002_v10 }
 0x8d9   : > { %v1011_v13 = vpack.c.bf16 %v1010_v12, %v1010_v12 }
 0x8db   : > { %2202 = vmatmul.mubr.msk.bf16.vlgmr.msra.gmra.mxu1 %vm1048_vm7, %v1011_v13 }
 0x8dc   : > { %2221 = vmatprep.mubr.msk.bf16.mxu1 %vm2474_vm1, %v2473_v8 }
 0x99b   : > { %v1086_v20 = vpop.f32.mrf.mxu1 }
 0x99c   : > { %v1087_v21 = vadd.f32 %v1086_v20, %v1023_v19 }
 0x99d   : > { %v2203_v22 = vpop.f32.mrf.mxu1 }
 0x99e   : > { %v1092_v24 = vadd.f32 %v1087_v21, %v937_v54 }
 0x99f   : > { %v1089_v26 = vpop.f32.mrf.mxu1 }
 0x9a0   : > { %v1093_v27 = vsel %vm296_vm0, %v1092_v24, 0.0 }
 0x9a1   : > { %1094 = vadd.xlane.f32.xlu0 %v1093_v27  ;;  %v2204_v29 = vpop.f32.mrf.mxu1 }
 0xa2a   : > { %v1095_v31 = vpop.xlane.xlu0 %1094 }
 0xa2b   : > { %v1096_v32 = vmul.f32 0.03125, %v1095_v31 }
 0xa2d   : > { %v1097_v33 = vsub.f32 %v1092_v24, %v1096_v32 }
 0xa2f   : > { %v1098_v34 = vmul.f32 %v1097_v33, %v1097_v33 }
 0xa31   : > { %v1099_v35 = vsel %vm296_vm0, %v1098_v34, 0.0 }
 0xa32   : > { %1100 = vadd.xlane.f32.xlu1 %v1099_v35 }
 0xabb   : > { %v1101_v37 = vpop.xlane.xlu1 %1100 }
 0xabc   : > { %v1102_v38 = vmul.f32 0.03125, %v1101_v37 }
 0xabe   : > { %v1103_v39 = vadd.f32 1e-12, %v1102_v38 }
 0xac0   : > { %2387 = vrsqrt.f32 %v1103_v39 }
 0xacd   : > { %v2388_v42 = vpop.eup %2387 }
 0xace   : > { %v1105_v30 = vmul.f32 %v2388_v42, %v1097_v33 }
 0xad0   : > { %v1110_v43 = vmul.f32 %v1109_v41, %v1105_v30 }
 0xad2   : > { %v2804_v44 = vadd.f32 %v1114_v23, %v1110_v43 }
 0xad4   : > { %v1116_v45 = vpack.c.bf16 %v2804_v44, %v2804_v44 }
 0xad6   : > { %2210 = vmatmul.mubr.msk.bf16.vlgmr.msra.gmra.mxu0 %vm296_vm0, %v1116_v45 }
 0xad7   : > { %2215 = vmatprep.mubr.msk.bf16.mxu0 %vm2474_vm1, %v2473_v8 }
 0xb96   : > { %v1175_v50 = vpop.f32.mrf.mxu0 }
 0xb97   : > { %v1176_v51 = vadd.f32 %v1175_v50, %v1125_v49 }
 0xb98   : > { %v2211_v52 = vpop.f32.mrf.mxu0 }
 0xb99   : > { %v2814_v53 = vpack.c.bf16 %v1176_v51, %v1176_v51 }
 0xb9a   : > { %v1178_v54 = vpop.f32.mrf.mxu0 }
 0xb9b   : > { %1293 = vrot.lane.b32.xlu1 %v2814_v53, %s2477_s9  ;;  %1183 = vrot.lane.b32.xlu0 %v2814_v53, %s2476_s8  ;;  %s3012_s8 = smov 56   ;;  %s3013_s9 = smov 48  }
 0xb9c   : > { %v2212_v55 = vpop.f32.mrf.mxu0 }
 0xb9f   : > { %1291 = vrot.lane.b32.xlu1 %v2814_v53, %s2475_s29  ;;  %1403 = vrot.lane.b32.xlu0 %v2814_v53, %s2478_s14  ;;  %s3011_s29 = smov 64   ;;  %s3014_s14 = smov 40  }
 0xba3   : > { %1401 = vrot.lane.b32.xlu1 %v2814_v53, %s2479_s15  ;;  %1513 = vrot.lane.b32.xlu0 %v2814_v53, %s2480_s16  ;;  %s3015_s15 = smov 8  }
 0xba7   : > { %1511 = vrot.lane.b32.xlu1 %v2814_v53, %s3010_s23  ;;  %s2058_s23 = sshll.u32 %s2552_s28, 7  ;;  %s2417_s28 = scalar_lea.vmem %s2416_s13, 256 }
 0xc0d   : > { %v1184_v25 = vpop.permute.xlu0 %1183  ;;  %v1294_v57 = vpop.permute.xlu1 %1293 }
 0xc0e   : > { %v1189_v56 = vsel %vm395_vm2, %v1184_v25, 0  ;;  %v1299_v58 = vsel %vm395_vm2, %v1294_v57, 0 }
 0xc0f   : > { %2214 = vmatpush3.bf16.xpose.msra.mxu0 %v1189_v56 }
 0xc10   : > { %2225 = vmatprep.subr.bf16.mxu0 %v2473_v8 }
 0xc11   : > { %v1404_v59 = vpop.permute.xlu0 %1403  ;;  %v1292_v61 = vpop.permute.xlu1 %1291 }
 0xc12   : > { %v1409_v62 = vsel %vm395_vm2, %v1404_v59, 0 }
 0xc15   : > { %v1514_v63 = vpop.permute.xlu0 %1513  ;;  %v1402_v0 = vpop.permute.xlu1 %1401 }
 0xc16   : > { %2216 = vmatmul.mubr.msk.bf16.vlgmr.msra.gmra.mxu0 %vm395_vm2, %v2814_v53  ;;  %v1519_v1 = vsel %vm395_vm2, %v1514_v63, 0 }
 0xc17   : > { %2226 = vmatpush3.bf16.xpose.msra.mxu0 %v1299_v58  ;;  %2227 = vmatprep.mubr.msk.bf16.mxu0 %vm2474_vm1, %v2473_v8 }
 0xc18   : > { %2237 = vmatprep.subr.bf16.mxu0 %v2473_v8 }
 0xc19   : > { %v1512_v2 = vpop.permute.xlu1 %1511 }
 0xc1e   : > { %2228 = vmatmul.mubr.msk.bf16.vlgmr.msra.gmra.mxu0 %vm395_vm2, %v1292_v61 }
 0xc1f   : > { %2238 = vmatpush3.bf16.xpose.msra.mxu0 %v1409_v62  ;;  %2239 = vmatprep.mubr.msk.bf16.mxu0 %vm2474_vm1, %v2473_v8 }
 0xc20   : > { %2249 = vmatprep.subr.bf16.mxu0 %v2473_v8 }
 0xc26   : > { %2240 = vmatmul.mubr.msk.bf16.vlgmr.msra.gmra.mxu0 %vm395_vm2, %v1402_v0 }
 0xc27   : > { %2250 = vmatpush3.bf16.xpose.msra.mxu0 %v1519_v1  ;;  %2251 = vmatprep.mubr.msk.bf16.mxu0 %vm2474_vm1, %v2473_v8 }
 0xc28   : > { %2261 = vmatprep.subr.bf16.mxu0 %v2473_v8 }
 0xc2e   : > { %2252 = vmatmul.mubr.msk.bf16.vlgmr.msra.gmra.mxu0 %vm395_vm2, %v1512_v2 }
 0xc2f   : > { %2265 = vmatprep.mubr.msk.bf16.mxu0 %vm2474_vm1, %v2473_v8 }
 0xcd6   : > { %v1225_v3 = vpop.f32.mrf.mxu0 }
 0xcd7   : > { %v1226_v4 = vadd.f32 %v1225_v3, %v2673_v47 }
 0xcd8   : > { %v2217_v5 = vpop.f32.mrf.mxu0 }
 0xcd9   : > { %v1231_v6 = vsel %vm395_vm2, %v1226_v4, -inf }
 0xcda   : > { %1232 = vmax.xlane.f32.xlu0 %v1231_v6  ;;  %v1228_v7 = vpop.f32.mrf.mxu0 }
 0xcdc   : > { %v2218_v9 = vpop.f32.mrf.mxu0 }
 0xcde   : > { %v1335_v10 = vpop.f32.mrf.mxu0 }
 0xcdf   : > { %v1336_v11 = vadd.f32 %v1335_v10, %v2673_v47 }
 0xce0   : > { %v2229_v12 = vpop.f32.mrf.mxu0 }
 0xce1   : > { %v1341_v13 = vsel %vm395_vm2, %v1336_v11, -inf }
 0xce2   : > { %1342 = vmax.xlane.f32.xlu1 %v1341_v13  ;;  %v1338_v19 = vpop.f32.mrf.mxu0 }
 0xce4   : > { %v2230_v20 = vpop.f32.mrf.mxu0 }
 0xce6   : > { %v1445_v21 = vpop.f32.mrf.mxu0 }
 0xce7   : > { %v1446_v22 = vadd.f32 %v1445_v21, %v2673_v47 }
 0xce8   : > { %v2241_v24 = vpop.f32.mrf.mxu0 }
 0xce9   : > { %v1451_v26 = vsel %vm395_vm2, %v1446_v22, -inf }
 0xcea   : > { %1452 = vmax.xlane.f32.xlu0 %v1451_v26  ;;  %v1448_v27 = vpop.f32.mrf.mxu0 }
 0xcec   : > { %v2242_v29 = vpop.f32.mrf.mxu0 }
 0xcee   : > { %v1555_v31 = vpop.f32.mrf.mxu0 }
 0xcef   : > { %v1556_v32 = vadd.f32 %v1555_v31, %v2673_v47 }
 0xcf0   : > { %v2253_v33 = vpop.f32.mrf.mxu0 }
 0xcf1   : > { %v1561_v34 = vsel %vm395_vm2, %v1556_v32, -inf }
 0xcf2   : > { %1562 = vmax.xlane.f32.xlu0 %v1561_v34  ;;  %v1558_v35 = vpop.f32.mrf.mxu0 }
 0xcf4   : > { %v2254_v16 = vpop.f32.mrf.mxu0 }
 0xcf5   : > { %v2357_v16 = vld [vmem:[%s2995_s3 + $0x18] sm:$0xff]  }
 0xcf6   : > { %2262 = vmatpush3.bf16.msra.mxu0 %v2357_v16 }
 0xcf7   : > { %2263 = vmatprep.subr.bf16.mxu0 %v2473_v8 }
 0xd63   : > { %v1233_v36 = vpop.xlane.xlu0 %1232 }
 0xd64   : > { %v1234_v37 = vsub.f32 %v1226_v4, %v1233_v36  ;;  %v2358_v36 = vld [vmem:[%s2995_s3 + $0x10] sm:$0xff]  }
 0xd65   : > { %2264 = vmatpush3.bf16.msra.mxu0 %v2358_v36 }
 0xd66   : > { %v1235_v38 = vmul.f32 1.442695, %v1234_v37  ;;  %2277 = vmatprep.subr.bf16.mxu0 %v2473_v8 }
 0xd68   : > { %2389 = vpow2.f32 %v1235_v38 }
 0xd6b   : > { %v1343_v39 = vpop.xlane.xlu1 %1342 }
 0xd6c   : > { %v1344_v41 = vsub.f32 %v1336_v11, %v1343_v39 }
 0xd6e   : > { %v1345_v42 = vmul.f32 1.442695, %v1344_v41 }
 0xd70   : > { %2391 = vpow2.f32 %v1345_v42 }
 0xd73   : > { %v1453_v43 = vpop.xlane.xlu0 %1452 }
 0xd74   : > { %v1454_v55 = vsub.f32 %v1446_v22, %v1453_v43 }
 0xd75   : > { %v2390_v30 = vpop.eup %2389 }
 0xd76   : > { %v1237_v23 = vsel %vm395_vm2, %v2390_v30, 0.0  ;;  %v1455_v25 = vmul.f32 1.442695, %v1454_v55  ;;  %v1645_v55 = vrot.slane %v2798_v40, %v857_v28  ;;  %v2359_v28 = vld [vmem:[%s2996_s4 + $0x18] sm:$0xff]  }
 0xd77   : > { %1238 = vadd.xlane.f32.xlu1 %v1237_v23 }
 0xd7b   : > { %v1563_v47 = vpop.xlane.xlu0 %1562 }
 0xd7c   : > { %v1564_v45 = vsub.f32 %v1556_v32, %v1563_v47 }
 0xd7d   : > { %v2392_v49 = vpop.eup %2391 }
 0xd7e   : > { %v1565_v50 = vmul.f32 1.442695, %v1564_v45  ;;  %v1347_v51 = vsel %vm395_vm2, %v2392_v49, 0.0 }
 0xd7f   : > { %1348 = vadd.xlane.f32.xlu0 %v1347_v51 }
 0xd80   : > { %2393 = vpow2.f32 %v1565_v50 }
 0xd81   : > { %2395 = vpow2.f32 %v1455_v25 }
 0xd88   : > { %1243 = vrot.lane.b32.xlu1 %v2814_v53, %s3011_s29 }
 0xd8d   : > { %v2394_v52 = vpop.eup %2393 }
 0xd8e   : > { %v1567_v54 = vsel %vm395_vm2, %v2394_v52, 0.0  ;;  %v2396_v56 = vpop.eup %2395 }
 0xd8f   : > { %1568 = vadd.xlane.f32.xlu0 %v1567_v54  ;;  %v1457_v57 = vsel %vm395_vm2, %v2396_v56, 0.0 }
 0xda5   : > { %1353 = vrot.lane.b32.xlu0 %v2814_v53, %s3012_s8 }
 0xdac   : > { %1458 = vadd.xlane.f32.xlu1 %v1457_v57 }
 0xdbd   : > { %1463 = vrot.lane.b32.xlu1 %v2814_v53, %s3013_s9 }
 0xdc1   : > { %1573 = vrot.lane.b32.xlu1 %v2814_v53, %s3014_s14 }
 0xe00   : > { %v1239_v58 = vpop.xlane.xlu1 %1238 }
 0xe01   : > { %2397 = vrcp.f32 %v1239_v58 }
 0xe04   : > { %v1244_v59 = vpop.permute.xlu1 %1243 }
 0xe05   : > { %v1249_v61 = vsel %vm459_vm4, %v1244_v59, 0 }
 0xe06   : > { %2220 = vmatpush3.bf16.msra.mxu1 %v1249_v61 }
 0xe07   : > { %2231 = vmatprep.subr.bf16.mxu1 %v2473_v8 }
 0xe08   : > { %v1349_v62 = vpop.xlane.xlu0 %1348 }
 0xe09   : > { %2399 = vrcp.f32 %v1349_v62 }
 0xe0e   : > { %v2398_v63 = vpop.eup %2397 }
 0xe0f   : > { %v1241_v0 = vmul.f32 %v2398_v63, %v2390_v30 }
 0xe11   : > { %v1242_v1 = vpack.c.bf16 %v1241_v0, %v1241_v0 }
 0xe13   : > { %2222 = vmatmul.mubr.msk.bf16.vlgmr.msra.gmra.mxu1 %vm395_vm2, %v1242_v1 }
 0xe14   : > { %2233 = vmatprep.mubr.msk.bf16.mxu1 %vm2474_vm1, %v2473_v8 }
 0xe16   : > { %v2400_v2 = vpop.eup %2399 }
 0xe17   : > { %v1351_v3 = vmul.f32 %v2400_v2, %v2392_v49 }
 0xe18   : > { %v1569_v53 = vpop.xlane.xlu0 %1568 }
 0xe19   : > { %v1352_v6 = vpack.c.bf16 %v1351_v3, %v1351_v3 }
 0xe1c   : > { %v1354_v4 = vpop.permute.xlu0 %1353 }
 0xe1d   : > { %v1359_v5 = vsel %vm459_vm4, %v1354_v4, 0 }
 0xe1e   : > { %2232 = vmatpush3.bf16.msra.mxu1 %v1359_v5 }
 0xe1f   : > { %2243 = vmatprep.subr.bf16.mxu1 %v2473_v8 }
 0xe21   : > { %2234 = vmatmul.mubr.msk.bf16.vlgmr.msra.gmra.mxu1 %vm395_vm2, %v1352_v6  ;;  %v1718_v6 = vrot.slane %v2798_v40, %v930_v46  ;;  %v2362_v46 = vld [vmem:[%s2997_s5 + $0x30] sm:$0xff]  }
 0xe22   : > { %2245 = vmatprep.mubr.msk.bf16.mxu1 %vm2474_vm1, %v2473_v8 }
 0xe35   : > { %v1459_v7 = vpop.xlane.xlu1 %1458 }
 0xe36   : > { %2401 = vrcp.f32 %v1459_v7 }
 0xe37   : > { %2403 = vrcp.f32 %v1569_v53 }
 0xe39   : > { %v1464_v9 = vpop.permute.xlu1 %1463 }
 0xe3a   : > { %v1469_v10 = vsel %vm459_vm4, %v1464_v9, 0 }
 0xe3b   : > { %2244 = vmatpush3.bf16.msra.mxu1 %v1469_v10  ;;  %v1723_v10 = vrot.slane %v2798_v40, %v935_v48  ;;  %v2363_v48 = vld [vmem:[%s2997_s5 + $0x28] sm:$0xff]  }
 0xe3c   : > { %2255 = vmatprep.subr.bf16.mxu1 %v2473_v8 }
 0xe3d   : > { %v1574_v13 = vpop.permute.xlu1 %1573 }
 0xe3e   : > { %v1579_v21 = vsel %vm459_vm4, %v1574_v13, 0 }
 0xe43   : > { %v2402_v11 = vpop.eup %2401 }
 0xe44   : > { %v1461_v12 = vmul.f32 %v2402_v11, %v2396_v56  ;;  %v2404_v20 = vpop.eup %2403 }
 0xe45   : > { %v1571_v22 = vmul.f32 %v2404_v20, %v2394_v52  ;;  %v2364_v20 = vld [vmem:[%s2997_s5 + $0x20] sm:$0xff]  }
 0xe46   : > { %v1462_v19 = vpack.c.bf16 %v1461_v12, %v1461_v12 }
 0xe47   : > { %v1572_v24 = vpack.c.bf16 %v1571_v22, %v1571_v22 }
 0xe48   : > { %2246 = vmatmul.mubr.msk.bf16.vlgmr.msra.gmra.mxu1 %vm395_vm2, %v1462_v19  ;;  %v2361_v19 = vld [vmem:[%s2997_s5 + $0x38] sm:$0xff]  }
 0xe49   : > { %2256 = vmatpush3.bf16.msra.mxu1 %v1579_v21  ;;  %2257 = vmatprep.mubr.msk.bf16.mxu1 %vm2474_vm1, %v2473_v8  ;;  %v1734_v21 = vrot.slane %v2798_v40, %v945_v60  ;;  %v1812_v60 = vrot.slane %v2798_v40, %v1022_v18 }
 0xe4a   : > { %2269 = vmatprep.subr.bf16.mxu1 %v2473_v8 }
 0xe50   : > { %2258 = vmatmul.mubr.msk.bf16.vlgmr.msra.gmra.mxu1 %vm395_vm2, %v1572_v24 }
 0xe51   : > { %2273 = vmatprep.mubr.msk.bf16.mxu1 %vm2474_vm1, %v2473_v8  ;;  %2270 = vmatpush3.bf16.msra.mxu1 %v2359_v28 }
 0xe52   : > { %2271 = vmatprep.subr.bf16.mxu1 %v2473_v8 }
 0xed3   : > { %v1285_v26 = vpop.f32.mrf.mxu1 }
 0xed5   : > { %v2223_v27 = vpop.f32.mrf.mxu1 }
 0xed7   : > { %v1288_v29 = vpop.f32.mrf.mxu1 }
 0xed9   : > { %v2224_v31 = vpop.f32.mrf.mxu1 }
 0xee1   : > { %v1395_v32 = vpop.f32.mrf.mxu1 }
 0xee2   : > { %1622 = vrot.lane.b32.xlu0 %v1395_v32, %s3015_s15  ;;  %s1917_s15 = scalar_lea.hbm %s2999_s7, %s2058_s23 }
 0xee3   : > { %v2235_v33 = vpop.f32.mrf.mxu1 }
 0xee5   : > { %v1398_v34 = vpop.f32.mrf.mxu1 }
 0xee7   : > { %v2236_v35 = vpop.f32.mrf.mxu1 }
 0xf08   : > { %v1505_v37 = vpop.f32.mrf.mxu1 }
 0xf09   : > { %1626 = vrot.lane.b32.xlu1 %v1505_v37, %s3016_s21  ;;  %s278_s21 = sand.u32 1, %s2463_s25  }
 0xf0a   : > { %v2247_v38 = vpop.f32.mrf.mxu1  ;;  %s1906_s16 = scalar_lea.sflag [#allocation3], %s278_s21 }
 0xf0c   : > { %v1508_v39 = vpop.f32.mrf.mxu1 }
 0xf0e   : > { %v2248_v41 = vpop.f32.mrf.mxu1 }
 0xf10   : > { %v1615_v42 = vpop.f32.mrf.mxu1 }
 0xf11   : > { %1630 = vrot.lane.b32.xlu0 %v1615_v42, %s3017_s18  ;;  %s1991_s18 = sshll.u32 %s278_s21, 3 }
 0xf12   : > { %v2259_v30 = vpop.f32.mrf.mxu1  ;;  %s280_s29 = scalar_lea.vmem [#allocation2], %s1991_s18 }
 0xf13   : > { %s1919_s8 = sshll.u32 %s280_s29, 4  ;;  %s1920_s8 = int_to_ptr.vmem [resolvable:$true] %s1919_s8 }
 0xf14   : > { %v1618_v23 = vpop.f32.mrf.mxu1  ;;  %s2411_s20 = scalar_lea.vmem %s1920_s8, 128  ;;  %p2418_p0 = scmp.lt.s32.totalorder %s1920_s8, %s2416_s13 }
 0xf15   : > { %p2412_p11 = scmp.ne.s32.totalorder %s1920_s8, %s2411_s20  ;;  %p2419_p1 = scmp.lt.s32.totalorder %s2417_s28, %s2411_s20 }
 0xf16   : > { %v2260_v43 = vpop.f32.mrf.mxu1 }
 0xf17   : > { %p2413_p12 = pnand %p2412_p11, %p2569_p5  ;;  %p2420_p2 = por %p2419_p1, %p2418_p0 }
 0xf19   : > { %p2414_p13 = pneg %p2413_p12 }
 0xf1b   : > { %p2421_p3 = pnand %p2420_p2, %p2414_p13 }
 0xf54   : > { %v1623_v47 = vpop.permute.xlu0 %1622 }
 0xf55   : > { %v1633_v49 = vsel %vm395_vm2, %v1285_v26, %v1623_v47 }
 0xf7b   : > { %v1627_v45 = vpop.permute.xlu1 %1626 }
 0xf7c   : > { %v1634_v50 = vsel %vm846_vm5, %v1633_v49, %v1627_v45 }
 0xf83   : > { %v1631_v51 = vpop.permute.xlu0 %1630 }
 0xf84   : > { %v1635_v52 = vsel %vm848_vm6, %v1634_v50, %v1631_v51 }
 0xf85   : > { %v1636_v54 = vpack.c.bf16 %v1635_v52, %v1635_v52 }
 0xf87   : > { %2266 = vmatmul.mubr.msk.bf16.vlgmr.msra.gmra.mxu0 %vm296_vm0, %v1636_v54  ;;  %v293_v54 = vld [vmem:[%s2998_s6 + $0x10] sm:$0x3] }
 0xf88   : > { %2285 = vmatprep.mubr.msk.bf16.mxu0 %vm2474_vm1, %v2473_v8  ;;  %2278 = vmatpush3.bf16.msra.mxu0 %v2361_v19 }
 0xf89   : > { %2279 = vmatprep.subr.bf16.mxu0 %v2473_v8 }
 0xf8c   : > { %2280 = vmatpush3.bf16.msra.mxu0 %v2362_v46 }
 0xf8d   : > { %2281 = vmatprep.subr.bf16.mxu0 %v2473_v8 }
 0xf90   : > { %2282 = vmatpush3.bf16.msra.mxu0 %v2363_v48 }
 0xf91   : > { %2283 = vmatprep.subr.bf16.mxu0 %v2473_v8 }
 0xf94   : > { %2284 = vmatpush3.bf16.msra.mxu0 %v2364_v20 }
0x1047   : > { %v1695_v25 = vpop.f32.mrf.mxu0 }
0x1048   : > { %v1696_v56 = vadd.f32 %v1695_v25, %v1645_v55  ;;  %v1897_v55 = vrot.slane %v293_v54, %v2606_v15 }
0x1049   : > { %v2267_v57 = vpop.f32.mrf.mxu0 }
0x104a   : > { %v1701_v58 = vadd.f32 %v1696_v56, %v2804_v44  ;;  %v2360_v44 = vld [vmem:[%s2996_s4 + $0x10] sm:$0xff]   ;;  %v1902_v57 = vrot.slane %v293_v54, %v2614_v17 }
0x104b   : > { %v1698_v59 = vpop.f32.mrf.mxu0  ;;  %2272 = vmatpush3.bf16.msra.mxu1 %v2360_v44 }
0x104c   : > { %v1702_v61 = vsel %vm296_vm0, %v1701_v58, 0.0 }
0x104d   : > { %1703 = vadd.xlane.f32.xlu1 %v1702_v61  ;;  %v2268_v62 = vpop.f32.mrf.mxu0 }
0x10d6   : > { %v1704_v63 = vpop.xlane.xlu1 %1703 }
0x10d7   : > { %v1705_v0 = vmul.f32 0.03125, %v1704_v63 }
0x10d9   : > { %v1706_v1 = vsub.f32 %v1701_v58, %v1705_v0 }
0x10db   : > { %v1707_v2 = vmul.f32 %v1706_v1, %v1706_v1 }
0x10dd   : > { %v1708_v53 = vsel %vm296_vm0, %v1707_v2, 0.0 }
0x10de   : > { %1709 = vadd.xlane.f32.xlu0 %v1708_v53 }
0x1167   : > { %v1710_v3 = vpop.xlane.xlu0 %1709 }
0x1168   : > { %v1711_v4 = vmul.f32 0.03125, %v1710_v3 }
0x116a   : > { %v1712_v5 = vadd.f32 1e-12, %v1711_v4 }
0x116c   : > { %2405 = vrsqrt.f32 %v1712_v5 }
0x1179   : > { %v2406_v7 = vpop.eup %2405 }
0x117a   : > { %v1714_v9 = vmul.f32 %v2406_v7, %v1706_v1 }
0x117c   : > { %v1719_v11 = vmul.f32 %v1718_v6, %v1714_v9 }
0x117e   : > { %v1724_v12 = vadd.f32 %v1723_v10, %v1719_v11 }
0x1180   : > { %v1725_v13 = vpack.c.bf16 %v1724_v12, %v1724_v12 }
0x1182   : > { %2274 = vmatmul.mubr.msk.bf16.vlgmr.msra.gmra.mxu1 %vm296_vm0, %v1725_v13 }
0x1242   : > { %v1784_v22 = vpop.f32.mrf.mxu1 }
0x1243   : > { %v1785_v24 = vadd.f32 %v1784_v22, %v1734_v21 }
0x1244   : > { %v2275_v26 = vpop.f32.mrf.mxu1 }
0x1245   : > { %v1791_v27 = vmul.f32 0.044715, %v1785_v24  ;;  %v1790_v36 = vmul.f32 0.5, %v1785_v24 }
0x1246   : > { %v1787_v29 = vpop.f32.mrf.mxu1 }
0x1247   : > { %v1792_v31 = vmul.f32 %v1791_v27, %v1785_v24 }
0x1248   : > { %v2276_v32 = vpop.f32.mrf.mxu1 }
0x1249   : > { %v1793_v33 = vmul.f32 %v1792_v31, %v1785_v24 }
0x124b   : > { %v1794_v34 = vadd.f32 %v1793_v33, %v1785_v24 }
0x124d   : > { %v1795_v35 = vmul.f32 0.7978846, %v1794_v34 }
0x124f   : > { %2407 = vtanh.f32 %v1795_v35 }
0x125c   : > { %v2408_v16 = vpop.eup %2407 }
0x125d   : > { %v1797_v37 = vadd.f32 1.0, %v2408_v16 }
0x125f   : > { %v1798_v8 = vmul.f32 %v1797_v37, %v1790_v36 }
0x1261   : > { %v1799_v38 = vpack.c.bf16 %v1798_v8, %v1798_v8 }
0x1263   : > { %2286 = vmatmul.mubr.msk.bf16.vlgmr.msra.gmra.mxu0 %vm1048_vm7, %v1799_v38 }
0x1323   : > { %v1874_v39 = vpop.f32.mrf.mxu0 }
0x1324   : > { %v1875_v41 = vadd.f32 %v1874_v39, %v1812_v60 }
0x1325   : > { %v2287_v42 = vpop.f32.mrf.mxu0 }
0x1326   : > { %v1880_v30 = vadd.f32 %v1875_v41, %v1724_v12 }
0x1327   : > { %v1877_v23 = vpop.f32.mrf.mxu0 }
0x1328   : > { %v1881_v43 = vsel %vm296_vm0, %v1880_v30, 0.0 }
0x1329   : > { %1882 = vadd.xlane.f32.xlu0 %v1881_v43  ;;  %v2288_v47 = vpop.f32.mrf.mxu0 }
0x13b2   : > { %v1883_v45 = vpop.xlane.xlu0 %1882 }
0x13b3   : > { %v1884_v49 = vmul.f32 0.03125, %v1883_v45 }
0x13b5   : > { %v1885_v50 = vsub.f32 %v1880_v30, %v1884_v49 }
0x13b7   : > { %v1886_v51 = vmul.f32 %v1885_v50, %v1885_v50 }
0x13b9   : > { %v1887_v52 = vsel %vm296_vm0, %v1886_v51, 0.0 }
0x13ba   : > { %1888 = vadd.xlane.f32.xlu1 %v1887_v52 }
0x1443   : > { %v1889_v14 = vpop.xlane.xlu1 %1888 }
0x1444   : > { %v1890_v18 = vmul.f32 0.03125, %v1889_v14 }
0x1446   : > { %v1891_v40 = vadd.f32 1e-12, %v1890_v18 }
0x1448   : > { %2409 = vrsqrt.f32 %v1891_v40 }
0x1455   : > { %v2410_v25 = vpop.eup %2409 }
0x1456   : > { %v1893_v56 = vmul.f32 %v2410_v25, %v1885_v50 }
0x1458   : > { %v1898_v58 = vmul.f32 %v1897_v55, %v1893_v56 }
0x145a   : > { %v1903_v59 = vadd.f32 %v1902_v57, %v1898_v58 }
0x145c   : > { %1904 = vst.msk [vmem:[%s280_s29] sm:$0xff] %vm296_vm0, %v1903_v59 }
0x145d   : > { %2424 = shalt.err (!%p2421_p3)
}
0x145e   : > { %s2425_s18 = scalar_lea.hbm %s1917_s15, 128  ;;  %s2429_s22 = scalar_lea.hbm %s2999_s7, 256 }
0x145f   : > { %p2426_p4 = scmp.ne.s32.totalorder %s1917_s15, %s2425_s18  ;;  %p2430_p9 = scmp.lt.s32.totalorder %s1917_s15, %s2999_s7 }
0x1460   : > { %p2431_p10 = scmp.lt.s32.totalorder %s2429_s22, %s2425_s18 }
0x1461   : > { %p2427_p7 = pnand %p2426_p4, %p2569_p5 }
0x1462   : > { %p2432_p11 = por %p2431_p10, %p2430_p9 }
0x1463   : > { %p2428_p8 = pneg %p2427_p7 }
0x1465   : > { %p2433_p12 = pnand %p2432_p11, %p2428_p8 }
0x1467   : > { %2436 = shalt.err (!%p2433_p12)
}
0x1468   : > { %2289 = dma.vmem_to_hbm [thread:$0]  (%p2569_p5), %s1920_s8, 128, %s1917_s15, %s1906_s16  }
0x1469 PF: > { %p2295_p13 = scmp.ge.s32.totalorder %s2471_s27, 2  ;;  %s1931_s9 = sand.u32 1, %s2459_s24  }
0x146a   : > { %s1932_s14 = scalar_lea.sflag [#allocation3], %s1931_s9 }
0x146b   : > { %p2292_p0 = pnand %p2295_p13, %p2573_p6 }
0x146d   : > { %p2293_p1 = pneg %p2292_p0 }
0x146f   : > { %2454 = dma.done.wait (%p2293_p1), %s1932_s14, 128  }
0x1470   : > { %2456 = vsyncadd (%p2293_p1), %s1932_s14, 4294967168  ;;  %p17_p2 = scmp.ge.s32.totalorder %s2556_s30, 4   ;;  %s3018_s24 = smov %s2463_s25 }
0x1471   : > { %s3019_s25 = smov %s2467_s26  ;;  %s3020_s26 = smov %s2567_s10 }
0x1472   : > { %s3021_s27 = smov %s2556_s30  ;;  %19 = sbr.rel (!%p17_p2) target bundleno = 3 (0x3), region = 90 }
0x1477   :  { %1937 = vsyncpa [#allocation3], 1 }
0x1478   :  { %1939 = vsyncpa [#allocation3 + $0x1], 1 }

</bundles_post_ra>
